<compile_context>
chip_gen: v5e
topology: v5e:2x2
jax: 0.10.0
libtpu: 0.0.40
codegen_flags: <defaults>
</compile_context>

<pallas_src>
import functools
import math

import jax
import jax.numpy as jnp
from jax import lax
from jax.experimental import pallas as pl
from jax.experimental.pallas import tpu as pltpu


COMPUTE_DTYPE = jnp.bfloat16   # matmul operand / activation dtype (f32 accum)
_SUBLANE_TILE = 16             # bf16 sublane tile: stacked channel stride pad
_LANE = 128


def _round_up(x, m):
    return ((x + m - 1) // m) * m


def _lcm(a, b):
    return a * b // math.gcd(a, b)


def _vmem_limit_bytes():
    """Generation-aware VMEM budget (review #6): ~3/4 of physical, capped."""
    try:
        phys = int(pltpu.get_tpu_info().vmem_capacity_bytes)
    except Exception:
        phys = 128 * 1024 * 1024
    return max(32 * 1024 * 1024, min(phys * 3 // 4, 96 * 1024 * 1024))


def _max_tile_lanes(vmem_limit):
    # Bigger tiles on 128 MiB parts (v5e/v6e), modest on v7x (64 MiB/TC).
    return 2048 if vmem_limit >= 64 * 1024 * 1024 else 1024


def _pick_spatial_tile(H, W, halo, max_lanes):
    """Flat row-tile length L: multiple of W (tiles start on image rows),
    128 (lane-dense stores) and the halo block, dividing H*W exactly.
    No >=2-tiles-per-image cap (review #9): the batch axis feeds both cores."""
    S = H * W
    base = _lcm(_lcm(W, _LANE), halo)
    if S % base != 0:
        # TODO(synk): odd spatial sizes need a masked / padded tiling path.
        raise NotImplementedError(
            f"spatial size H={H} W={W} does not tile into {base}-lane row blocks")
    best = base
    m = base
    while m <= min(max_lanes, S):
        if S % m == 0:
            best = m
        m += base
    return best


# ---------------------------------------------------------------------------
# Per-stage kernel (general path): Conv3x3(pad=1, stride=1) + ReLU
# ---------------------------------------------------------------------------
def conv3x3_relu_stage(x_flat, w, b, *, H, W, compute_dtype=COMPUTE_DTYPE,
                       max_lanes=None, stack_taps=None):
    """One `net` stage on the flat NCHW layout.

    x_flat : (N, Cin, H*W) activation (any float dtype; cast to bf16)
    w      : (3, 3, Cin, Cout)        b : (Cout,)
    returns  (N, Cout, H*W) in `compute_dtype`.
    """
    N, Cin, S = x_flat.shape
    assert S == H * W
    Cout = w.shape[-1]

    vmem_limit = _vmem_limit_bytes()
    if max_lanes is None:
        max_lanes = _max_tile_lanes(vmem_limit)
    HALO = _round_up(W + 1, _LANE)          # minimal halo block (review #1)
    L = _pick_spatial_tile(H, W, HALO, max_lanes)
    R = S // L
    LW = HALO + L + HALO
    NBLK = L // HALO
    LAST_BLK = S // HALO - 1

    # Cout tiling (review #8): bound the accumulator / match the MXU height.
    if Cout <= 256:
        TCo = Cout
    elif Cout % 256 == 0:
        TCo = 256
    elif Cout % 128 == 0:
        TCo = 128
    else:
        TCo = Cout      # TODO(synk): pad odd Cout so it can still be tiled.
    CO = Cout // TCo

    if stack_taps is None:
        stack_taps = Cin <= 64              # review #2 threshold

    x_c = x_flat.astype(compute_dtype)
    b_arg = b.reshape(Cout, 1).astype(jnp.float32)

    if stack_taps:
        # (Cout, 9*CPAD) stacked weight; channel stride padded to the bf16
        # sublane tile so every in-kernel stacking store is tile-aligned.
        CPAD = _round_up(Cin, _SUBLANE_TILE)
        w9 = w.reshape(9, Cin, Cout)
        wpad = jnp.zeros((9, CPAD, Cout), w.dtype).at[:, :Cin, :].set(w9)
        w_arg = (jnp.transpose(wpad, (2, 0, 1))
                 .reshape(Cout, 9 * CPAD).astype(compute_dtype))
        w_block, w_index = (TCo, 9 * CPAD), (lambda n, r, co: (co, 0))
    else:
        CPAD = Cin
        w_arg = (jnp.transpose(w.reshape(9, Cin, Cout), (0, 2, 1))
                 .astype(compute_dtype))                       # (9, Cout, Cin)
        w_block, w_index = (9, TCo, Cin), (lambda n, r, co: (0, co, 0))

    # Single-buffer multi-MiB constant weights (review #7, v7x VMEM headroom).
    w_kwargs = {}
    if w_arg.size * w_arg.dtype.itemsize >= (4 << 20):
        w_kwargs = dict(pipeline_mode=pl.Buffered(1))
    w_spec = pl.BlockSpec(w_block, w_index, **w_kwargs)

    in_specs = [
        # backward halo (clamped at the image top; overwritten with zeros)
        pl.BlockSpec((1, Cin, HALO),
                     lambda n, r, co: (n, 0, jnp.maximum(r * NBLK - 1, 0))),
        # current row tile
        pl.BlockSpec((1, Cin, L), lambda n, r, co: (n, 0, r)),
        # forward halo (clamped at the image bottom; overwritten with zeros)
        pl.BlockSpec((1, Cin, HALO),
                     lambda n, r, co: (n, 0, jnp.minimum((r + 1) * NBLK, LAST_BLK))),
        w_spec,
        pl.BlockSpec((TCo, 1), lambda n, r, co: (co, 0)),
    ]
    out_spec = pl.BlockSpec((1, TCo, L), lambda n, r, co: (n, co, r))

    scratch = [pltpu.VMEM((Cin, LW), compute_dtype)]
    if stack_taps:
        scratch.append(pltpu.VMEM((9 * CPAD, L), compute_dtype))

    def kernel(back_ref, cur_ref, fwd_ref, w_ref, b_ref, o_ref, win_ref, *stk):
        r = pl.program_id(1)
        co = pl.program_id(2)
        n_r = pl.num_programs(1)
        first_co = co == 0

        # -- stitch the (Cin, HALO + L + HALO) window once per (n, r) --------
        @pl.when(jnp.logical_and(first_co, r == 0))
        def _():                       # image top: halo is zero padding
            win_ref[:, 0:HALO] = jnp.zeros((Cin, HALO), compute_dtype)

        @pl.when(jnp.logical_and(first_co, r > 0))
        def _():
            win_ref[:, 0:HALO] = back_ref[0]

        @pl.when(first_co)
        def _():
            win_ref[:, HALO:HALO + L] = cur_ref[0]

        @pl.when(jnp.logical_and(first_co, r == n_r - 1))
        def _():                       # image bottom: halo is zero padding
            win_ref[:, HALO + L:] = jnp.zeros((Cin, HALO), compute_dtype)

        @pl.when(jnp.logical_and(first_co, r < n_r - 1))
        def _():
            win_ref[:, HALO + L:] = fwd_ref[0]

        if stack_taps:
            stk_ref = stk[0]

            @pl.when(first_co)
            def _():
                # Left/right edge masks folded into the stack build (#10).
                col = lax.broadcasted_iota(jnp.int32, (1, L), 1) % W
                not_l = col != 0           # output x == 0   -> zero kw==0 tap
                not_r = col != W - 1       # output x == W-1 -> zero kw==2 tap
                if CPAD != Cin:            # keep padded channel rows at zero
                    stk_ref[...] = jnp.zeros((9 * CPAD, L), compute_dtype)
                for kh in range(3):
                    for kw in range(3):
                        off = HALO + (kh - 1) * W + (kw - 1)
                        val = win_ref[:, off:off + L]
                        if kw == 0:
                            val = jnp.where(not_l, val, jnp.zeros_like(val))
                        elif kw == 2:
                            val = jnp.where(not_r, val, jnp.zeros_like(val))
                        t = 3 * kh + kw
                        stk_ref[t * CPAD:t * CPAD + Cin, :] = val

            # Single MXU contraction over K = 9*CPAD; bias added once in f32.
            res = jnp.dot(w_ref[...], stk_ref[...],
                          preferred_element_type=jnp.float32) + b_ref[...]
        else:
            # Large-Cin fallback: nine K=Cin matmuls accumulated in f32.
            col = lax.broadcasted_iota(jnp.int32, (1, L), 1) % W
            not_l = col != 0
            not_r = col != W - 1
            res = jnp.zeros((TCo, L), jnp.float32) + b_ref[...]
            for kh in range(3):
                for kw in range(3):
                    off = HALO + (kh - 1) * W + (kw - 1)
                    a = win_ref[:, off:off + L]
                    if kw == 0:
                        a = jnp.where(not_l, a, jnp.zeros_like(a))
                    elif kw == 2:
                        a = jnp.where(not_r, a, jnp.zeros_like(a))
                    res = res + jnp.dot(w_ref[3 * kh + kw], a,
                                        preferred_element_type=jnp.float32)

        o_ref[0] = jnp.maximum(res, 0.0).astype(o_ref.dtype)

    return pl.pallas_call(
        kernel,
        out_shape=jax.ShapeDtypeStruct((N, Cout, S), compute_dtype),
        grid_spec=pltpu.PrefetchScalarGridSpec(
            num_scalar_prefetch=0,
            grid=(N, R, CO),
            in_specs=in_specs,
            out_specs=out_spec,
            scratch_shapes=scratch),
        compiler_params=pltpu.CompilerParams(
            dimension_semantics=("parallel", "parallel", "arbitrary"),
            vmem_limit_bytes=vmem_limit),
    )(x_c, x_c, x_c, w_arg, b_arg)


# ---------------------------------------------------------------------------
# Fused whole-network kernel (small-activation path, review #5)
# ---------------------------------------------------------------------------
def _fused_vmem_bytes(cins, couts, S, halo, itemsize=2):
    n_bytes = 2 * cins[0] * S * itemsize                       # input (dbuf)
    for ci, co in zip(cins, couts):
        cpad = _round_up(ci, _SUBLANE_TILE)
        n_bytes += 2 * co * S * itemsize                       # output (dbuf)
        n_bytes += 2 * co * 9 * cpad * itemsize                 # weights
        n_bytes += 2 * co * 4                                   # bias
    max_cin = max(cins)
    max_cpad = max(_round_up(c, _SUBLANE_TILE) for c in cins)
    n_bytes += max_cin * (S + 2 * halo) * itemsize              # window scratch
    n_bytes += 9 * max_cpad * S * itemsize                      # stack scratch
    return n_bytes


def _use_fused(cins, couts, H, W):
    S = H * W
    if S % _LANE != 0:
        return False
    if max(cins) > 256 or max(couts) > 256:
        return False          # keep the Cout-tiled per-stage path instead
    halo = _round_up(W + 1, _LANE)
    return _fused_vmem_bytes(cins, couts, S, halo) <= _vmem_limit_bytes() // 2


def fused_conv_stack(x_flat, params, *, H, W, compute_dtype=COMPUTE_DTYPE):
    """All stages in one pallas_call; activation stays resident in VMEM.

    x_flat : (N, C0, H*W);  params : list of ((3,3,Cin,Cout) w, (Cout,) b).
    Returns a list of per-stage (N, Cout_s, H*W) activations (compute_dtype).
    """
    N, C0, S = x_flat.shape
    assert S == H * W
    HALO = _round_up(W + 1, _LANE)
    LW = HALO + S + HALO
    ns = len(params)

    cins = [C0] + [w.shape[-1] for (w, _) in params[:-1]]
    couts = [w.shape[-1] for (w, _) in params]
    cpads = [_round_up(c, _SUBLANE_TILE) for c in cins]
    max_cin, max_cpad = max(cins), max(cpads)

    flat_inputs = [x_flat.astype(compute_dtype)]
    in_specs = [pl.BlockSpec((1, C0, S), lambda n: (n, 0, 0))]
    for (w, b), cin, cpad, cout in zip(params, cins, cpads, couts):
        w9 = w.reshape(9, cin, cout)
        wpad = jnp.zeros((9, cpad, cout), w.dtype).at[:, :cin, :].set(w9)
        wstk = (jnp.transpose(wpad, (2, 0, 1))
                .reshape(cout, 9 * cpad).astype(compute_dtype))
        flat_inputs += [wstk, b.reshape(cout, 1).astype(jnp.float32)]
        in_specs += [pl.BlockSpec((cout, 9 * cpad), lambda n: (0, 0)),
                     pl.BlockSpec((cout, 1), lambda n: (0, 0))]

    out_shape = tuple(jax.ShapeDtypeStruct((N, c, S), compute_dtype)
                      for c in couts)
    out_specs = [pl.BlockSpec((1, c, S), lambda n: (n, 0, 0)) for c in couts]

    scratch = [pltpu.VMEM((max_cin, LW), compute_dtype),
               pltpu.VMEM((9 * max_cpad, S), compute_dtype)]

    def kernel(*args):
        x_ref = args[0]
        w_refs = [args[1 + 2 * s] for s in range(ns)]
        b_refs = [args[2 + 2 * s] for s in range(ns)]
        o_refs = list(args[1 + 2 * ns:1 + 3 * ns])
        win_ref, stk_ref = args[-2], args[-1]

        col = lax.broadcasted_iota(jnp.int32, (1, S), 1) % W
        not_l = col != 0
        not_r = col != W - 1

        act = x_ref[0]                      # (C0, S) value, stays on-chip
        for s in range(ns):
            cin, cpad = cins[s], cpads[s]
            # Explicit zero halos -> no top / bottom masking needed.
            win_ref[0:cin, 0:HALO] = jnp.zeros((cin, HALO), compute_dtype)
            win_ref[0:cin, HALO:HALO + S] = act
            win_ref[0:cin, HALO + S:LW] = jnp.zeros((cin, HALO), compute_dtype)
            if cpad != cin:
                stk_ref[0:9 * cpad, :] = jnp.zeros((9 * cpad, S), compute_dtype)
            for kh in range(3):
                for kw in range(3):
                    off = HALO + (kh - 1) * W + (kw - 1)
                    val = win_ref[0:cin, off:off + S]
                    if kw == 0:
                        val = jnp.where(not_l, val, jnp.zeros_like(val))
                    elif kw == 2:
                        val = jnp.where(not_r, val, jnp.zeros_like(val))
                    t = 3 * kh + kw
                    stk_ref[t * cpad:t * cpad + cin, :] = val
            res = jnp.dot(w_refs[s][...], stk_ref[0:9 * cpad, :],
                          preferred_element_type=jnp.float32) + b_refs[s][...]
            act = jnp.maximum(res, 0.0).astype(compute_dtype)
            o_refs[s][0] = act

    outs = pl.pallas_call(
        kernel,
        out_shape=out_shape,
        grid_spec=pltpu.PrefetchScalarGridSpec(
            num_scalar_prefetch=0,
            grid=(N,),
            in_specs=in_specs,
            out_specs=out_specs,
            scratch_shapes=scratch),
        compiler_params=pltpu.CompilerParams(
            dimension_semantics=("parallel",),
            vmem_limit_bytes=_vmem_limit_bytes()),
    )(*flat_inputs)
    return list(outs)


# ---------------------------------------------------------------------------
# BaseNetworkWithSkips analog
# ---------------------------------------------------------------------------
class BaseNetworkWithSkips:
    """Common base network (JAX/Pallas version of the PyTorch module)."""

    def __init__(self, net, shortname, stride, out_features):
        # net: list of (w, b) stages; each stage is Conv3x3(pad=1) + ReLU.
        self.net = list(net)
        self.shortname = shortname
        self.stride = stride
        self.out_features = out_features

    def forward(self, *args):
        assert len(args) == 1
        x = args[0]                                     # NCHW, like PyTorch
        outputs = {'input': x}
        N, C, H, W = x.shape
        cins = [C] + [w.shape[-1] for (w, _) in self.net[:-1]]
        couts = [w.shape[-1] for (w, _) in self.net]

        x_flat = x.reshape(N, C, H * W)
        if _use_fused(cins, couts, H, W):
            stage_outs = fused_conv_stack(x_flat, self.net, H=H, W=W)
        else:
            stage_outs = []
            cur = x_flat
            for (w, b) in self.net:
                cur = conv3x3_relu_stage(cur, w, b, H=H, W=W)
                stage_outs.append(cur)

        for i, (o, c) in enumerate(zip(stage_outs, couts)):
            outputs['res%d' % (i + 1)] = o.reshape(N, c, H, W)
        y = outputs['res%d' % len(self.net)]
        # TODO(synk): JAX arrays cannot carry an `.all_outputs` attribute, so
        # the skip dict is returned alongside the final tensor instead.
        return y, outputs

    __call__ = forward


def _make_params(key, channels):
    """Deterministic Kaiming-ish init for the synthetic conv stack."""
    params = []
    for cin, cout in zip(channels[:-1], channels[1:]):
        key, k_w, k_b = jax.random.split(key, 3)
        std = (2.0 / (9 * cin)) ** 0.5
        w = std * jax.random.normal(k_w, (3, 3, cin, cout), jnp.float32)
        b = 0.01 * jax.random.normal(k_b, (cout,), jnp.float32)
        params.append((w, b))
    return params


def _reference_stage(x_nchw, w, b, compute_dtype):
    """Pure-JAX reference for one stage with matched operand rounding
    (operands rounded to `compute_dtype`, accumulation in float32)."""
    N, Cin, H, W = x_nchw.shape
    Cout = w.shape[-1]
    xp = jnp.pad(x_nchw.astype(compute_dtype).astype(jnp.float32),
                 ((0, 0), (0, 0), (1, 1), (1, 1)))
    wc = w.astype(compute_dtype).astype(jnp.float32)
    acc = jnp.zeros((N, Cout, H, W), jnp.float32) + b[None, :, None, None]
    for kh in range(3):
        for kw in range(3):
            acc = acc + jnp.einsum('ncyx,co->noyx',
                                   xp[:, :, kh:kh + H, kw:kw + W], wc[kh, kw],
                                   preferred_element_type=jnp.float32)
    return jnp.maximum(acc, 0.0)


if __name__ == "__main__":
    key = jax.random.PRNGKey(0)
    k_in, k_par = jax.random.split(key)

    N, C, H, W = 2, 4, 16, 16
    x = jax.random.normal(k_in, (N, C, H, W), jnp.float32)      # NCHW input

    channels = [C, 8, 16, 32]
    net_params = _make_params(k_par, channels)

    model = BaseNetworkWithSkips(net_params, shortname="synthnet",
                                 stride=1, out_features=channels[-1])

    forward = jax.jit(model.forward)
    y, all_outputs = forward(x)
    y = jax.block_until_ready(y)

    # Shapes / skip-dict structure.
    assert y.shape == (N, channels[-1], H, W)
    assert set(all_outputs.keys()) == {'input', 'res1', 'res2', 'res3'}
    for i, cout in enumerate(channels[1:], start=1):
        assert all_outputs['res%d' % i].shape == (N, cout, H, W)
    assert bool(jnp.array_equal(y, all_outputs['res3']))

    # Per-stage correctness (fused path) vs a pure-JAX reference with matched
    # bf16 operand rounding, fed with the kernel's own previous-stage output.
    # NOTE: per the perf review, inter-stage activations are now bf16.
    prev = x
    for i, (w, b) in enumerate(net_params):
        ref_i = _reference_stage(prev, w, b, COMPUTE_DTYPE)
        got_i = all_outputs['res%d' % (i + 1)].astype(jnp.float32)
        tol = 1e-2 + 1e-2 * float(jnp.max(jnp.abs(ref_i)))
        err = float(jnp.max(jnp.abs(got_i - ref_i)))
        assert err < tol, f"fused stage {i + 1} mismatch: {err} (tol {tol})"
        prev = got_i

    # Also exercise the general tiled per-stage kernel: forces L=128 so the
    # halo blocks and top/bottom boundary handling run, and covers both the
    # tap-stacked and the 9-matmul weight paths.
    x_flat = x.reshape(N, C, H * W)
    w0, b0 = net_params[0]
    ref1 = _reference_stage(x, w0, b0, COMPUTE_DTYPE)
    tol1 = 1e-2 + 1e-2 * float(jnp.max(jnp.abs(ref1)))
    for stack_taps in (True, False):
        stage_fn = jax.jit(functools.partial(
            conv3x3_relu_stage, H=H, W=W, max_lanes=128, stack_taps=stack_taps))
        got1 = jax.block_until_ready(stage_fn(x_flat, w0, b0))
        got1 = got1.astype(jnp.float32).reshape(N, -1, H, W)
        err = float(jnp.max(jnp.abs(got1 - ref1)))
        assert err < tol1, f"tiled stage (stack={stack_taps}) mismatch: {err}"

    print("KERNEL_OK")
</pallas_src>

<mosaic_0001>
module attributes {stable_mosaic.version = 11 : i64} {
  func.func @kernel(%arg0: i32, %arg1: memref<1x4x256xbf16, #tpu.memory_space<vmem>>, %arg2: memref<8x144xbf16, #tpu.memory_space<vmem>>, %arg3: memref<8x1xf32, #tpu.memory_space<vmem>>, %arg4: memref<16x144xbf16, #tpu.memory_space<vmem>>, %arg5: memref<16x1xf32, #tpu.memory_space<vmem>>, %arg6: memref<32x144xbf16, #tpu.memory_space<vmem>>, %arg7: memref<32x1xf32, #tpu.memory_space<vmem>>, %arg8: memref<1x8x256xbf16, #tpu.memory_space<vmem>>, %arg9: memref<1x16x256xbf16, #tpu.memory_space<vmem>>, %arg10: memref<1x32x256xbf16, #tpu.memory_space<vmem>>, %arg11: memref<16x512xbf16, #tpu.memory_space<vmem>>, %arg12: memref<144x256xbf16, #tpu.memory_space<vmem>>) attributes {dimension_semantics = [#tpu.dimension_semantics<parallel>], iteration_bounds = array<i64: 2>, scalar_prefetch = 0 : i64, scratch_operands = 2 : i64, tpu.core_type = #tpu.core_type<tc>, window_params = [{transform_indices = @transform_0, window_bounds = array<i64: 1, 4, 256>}, {pipeline_mode = #tpu.pipeline_mode<synchronous>, transform_indices = @transform_1, window_bounds = array<i64: 8, 144>}, {pipeline_mode = #tpu.pipeline_mode<synchronous>, transform_indices = @transform_2, window_bounds = array<i64: 8, 1>}, {pipeline_mode = #tpu.pipeline_mode<synchronous>, transform_indices = @transform_3, window_bounds = array<i64: 16, 144>}, {pipeline_mode = #tpu.pipeline_mode<synchronous>, transform_indices = @transform_4, window_bounds = array<i64: 16, 1>}, {pipeline_mode = #tpu.pipeline_mode<synchronous>, transform_indices = @transform_5, window_bounds = array<i64: 32, 144>}, {pipeline_mode = #tpu.pipeline_mode<synchronous>, transform_indices = @transform_6, window_bounds = array<i64: 32, 1>}, {transform_indices = @transform_7, window_bounds = array<i64: 1, 8, 256>}, {transform_indices = @transform_8, window_bounds = array<i64: 1, 16, 256>}, {transform_indices = @transform_9, window_bounds = array<i64: 1, 32, 256>}]} {
    %0 = tpu.iota {dimensions = array<i32: 1>} : vector<1x256xi32>
    %c16_i32 = arith.constant 16 : i32
    %c0_i32 = arith.constant 0 : i32
    %1 = arith.cmpi eq, %c16_i32, %c0_i32 : i32
    %c1_i32 = arith.constant 1 : i32
    %2 = arith.select %1, %c1_i32, %c16_i32 : i32
    %3 = vector.broadcast %2 : i32 to vector<1x256xi32>
    %4 = arith.remsi %0, %3 : vector<1x256xi32>
    %c0_i32_0 = arith.constant 0 : i32
    %5 = vector.broadcast %c0_i32_0 : i32 to vector<1x256xi32>
    %6 = arith.cmpi ne, %4, %5 : vector<1x256xi32>
    %c0_i32_1 = arith.constant 0 : i32
    %7 = vector.broadcast %c0_i32_1 : i32 to vector<1x256xi32>
    %8 = arith.cmpi slt, %4, %7 : vector<1x256xi32>
    %c0_i32_2 = arith.constant 0 : i32
    %9 = arith.cmpi slt, %2, %c0_i32_2 : i32
    %10 = vector.broadcast %9 : i1 to vector<1x256xi1>
    %11 = vector.broadcast %10 : vector<1x256xi1> to vector<1x256xi1>
    %12 = arith.xori %8, %11 : vector<1x256xi1>
    %13 = arith.andi %12, %6 : vector<1x256xi1>
    %14 = vector.broadcast %2 : i32 to vector<1x256xi32>
    %15 = arith.addi %4, %14 : vector<1x256xi32>
    %16 = arith.select %13, %15, %4 : vector<1x256xi1>, vector<1x256xi32>
    %c0_i32_3 = arith.constant 0 : i32
    %17 = vector.broadcast %c0_i32_3 : i32 to vector<1x256xi32>
    %18 = arith.cmpi ne, %16, %17 : vector<1x256xi32>
    %c15_i32 = arith.constant 15 : i32
    %19 = vector.broadcast %c15_i32 : i32 to vector<1x256xi32>
    %20 = arith.cmpi ne, %16, %19 : vector<1x256xi32>
    %c0 = arith.constant 0 : index
    %c0_4 = arith.constant 0 : index
    %c0_5 = arith.constant 0 : index
    %21 = vector.load %arg1[%c0, %c0_4, %c0_5] : memref<1x4x256xbf16, #tpu.memory_space<vmem>>, vector<1x4x256xbf16>
    %22 = vector.shape_cast %21 : vector<1x4x256xbf16> to vector<4x256xbf16>
    %cst = arith.constant 0.000000e+00 : bf16
    %23 = vector.broadcast %cst : bf16 to vector<4x128xbf16>
    %c0_6 = arith.constant 0 : index
    %c0_7 = arith.constant 0 : index
    %24 = vector.load %arg11[%c0_6, %c0_7] : memref<16x512xbf16, #tpu.memory_space<vmem>>, vector<4x128xbf16>
    tpu.vector_store %arg11[%c0_6, %c0_7], %23 {strides = array<i32>} : memref<16x512xbf16, #tpu.memory_space<vmem>>, vector<4x128xbf16>,
    %c0_8 = arith.constant 0 : index
    %c128 = arith.constant 128 : index
    %25 = vector.load %arg11[%c0_8, %c128] : memref<16x512xbf16, #tpu.memory_space<vmem>>, vector<4x256xbf16>
    tpu.vector_store %arg11[%c0_8, %c128], %22 {strides = array<i32>} : memref<16x512xbf16, #tpu.memory_space<vmem>>, vector<4x256xbf16>,
    %cst_9 = arith.constant 0.000000e+00 : bf16
    %26 = vector.broadcast %cst_9 : bf16 to vector<4x128xbf16>
    %c0_10 = arith.constant 0 : index
    %c384 = arith.constant 384 : index
    %27 = vector.load %arg11[%c0_10, %c384] : memref<16x512xbf16, #tpu.memory_space<vmem>>, vector<4x128xbf16>
    tpu.vector_store %arg11[%c0_10, %c384], %26 {strides = array<i32>} : memref<16x512xbf16, #tpu.memory_space<vmem>>, vector<4x128xbf16>,
    %cst_11 = arith.constant 0.000000e+00 : bf16
    %28 = vector.broadcast %cst_11 : bf16 to vector<144x256xbf16>
    %c0_12 = arith.constant 0 : index
    %c0_13 = arith.constant 0 : index
    %29 = vector.load %arg12[%c0_12, %c0_13] : memref<144x256xbf16, #tpu.memory_space<vmem>>, vector<144x256xbf16>
    tpu.vector_store %arg12[%c0_12, %c0_13], %28 {strides = array<i32>} : memref<144x256xbf16, #tpu.memory_space<vmem>>, vector<144x256xbf16>,
    %c0_14 = arith.constant 0 : index
    %c111 = arith.constant 111 : index
    %30 = vector.load %arg11[%c0_14, %c111] : memref<16x512xbf16, #tpu.memory_space<vmem>>, vector<4x256xbf16>
    %cst_15 = arith.constant 0.000000e+00 : bf16
    %31 = vector.broadcast %cst_15 : bf16 to vector<4x256xbf16>
    %32 = vector.shape_cast %18 : vector<1x256xi1> to vector<1x256xi1>
    %33 = vector.broadcast %32 : vector<1x256xi1> to vector<4x256xi1>
    %34 = arith.select %33, %30, %31 : vector<4x256xi1>, vector<4x256xbf16>
    %c0_16 = arith.constant 0 : index
    %c0_17 = arith.constant 0 : index
    %35 = vector.load %arg12[%c0_16, %c0_17] : memref<144x256xbf16, #tpu.memory_space<vmem>>, vector<4x256xbf16>
    tpu.vector_store %arg12[%c0_16, %c0_17], %34 {strides = array<i32>} : memref<144x256xbf16, #tpu.memory_space<vmem>>, vector<4x256xbf16>,
    %c0_18 = arith.constant 0 : index
    %c112 = arith.constant 112 : index
    %36 = vector.load %arg11[%c0_18, %c112] : memref<16x512xbf16, #tpu.memory_space<vmem>>, vector<4x256xbf16>
    %c16 = arith.constant 16 : index
    %c0_19 = arith.constant 0 : index
    %37 = vector.load %arg12[%c16, %c0_19] : memref<144x256xbf16, #tpu.memory_space<vmem>>, vector<4x256xbf16>
    tpu.vector_store %arg12[%c16, %c0_19], %36 {strides = array<i32>} : memref<144x256xbf16, #tpu.memory_space<vmem>>, vector<4x256xbf16>,
    %c0_20 = arith.constant 0 : index
    %c113 = arith.constant 113 : index
    %38 = vector.load %arg11[%c0_20, %c113] : memref<16x512xbf16, #tpu.memory_space<vmem>>, vector<4x256xbf16>
    %cst_21 = arith.constant 0.000000e+00 : bf16
    %39 = vector.broadcast %cst_21 : bf16 to vector<4x256xbf16>
    %40 = vector.shape_cast %20 : vector<1x256xi1> to vector<1x256xi1>
    %41 = vector.broadcast %40 : vector<1x256xi1> to vector<4x256xi1>
    %42 = arith.select %41, %38, %39 : vector<4x256xi1>, vector<4x256xbf16>
    %c32 = arith.constant 32 : index
    %c0_22 = arith.constant 0 : index
    %43 = vector.load %arg12[%c32, %c0_22] : memref<144x256xbf16, #tpu.memory_space<vmem>>, vector<4x256xbf16>
    tpu.vector_store %arg12[%c32, %c0_22], %42 {strides = array<i32>} : memref<144x256xbf16, #tpu.memory_space<vmem>>, vector<4x256xbf16>,
    %c0_23 = arith.constant 0 : index
    %c127 = arith.constant 127 : index
    %44 = vector.load %arg11[%c0_23, %c127] : memref<16x512xbf16, #tpu.memory_space<vmem>>, vector<4x256xbf16>
    %cst_24 = arith.constant 0.000000e+00 : bf16
    %45 = vector.broadcast %cst_24 : bf16 to vector<4x256xbf16>
    %46 = vector.shape_cast %18 : vector<1x256xi1> to vector<1x256xi1>
    %47 = vector.broadcast %46 : vector<1x256xi1> to vector<4x256xi1>
    %48 = arith.select %47, %44, %45 : vector<4x256xi1>, vector<4x256xbf16>
    %c48 = arith.constant 48 : index
    %c0_25 = arith.constant 0 : index
    %49 = vector.load %arg12[%c48, %c0_25] : memref<144x256xbf16, #tpu.memory_space<vmem>>, vector<4x256xbf16>
    tpu.vector_store %arg12[%c48, %c0_25], %48 {strides = array<i32>} : memref<144x256xbf16, #tpu.memory_space<vmem>>, vector<4x256xbf16>,
    %c0_26 = arith.constant 0 : index
    %c128_27 = arith.constant 128 : index
    %50 = vector.load %arg11[%c0_26, %c128_27] : memref<16x512xbf16, #tpu.memory_space<vmem>>, vector<4x256xbf16>
    %c64 = arith.constant 64 : index
    %c0_28 = arith.constant 0 : index
    %51 = vector.load %arg12[%c64, %c0_28] : memref<144x256xbf16, #tpu.memory_space<vmem>>, vector<4x256xbf16>
    tpu.vector_store %arg12[%c64, %c0_28], %50 {strides = array<i32>} : memref<144x256xbf16, #tpu.memory_space<vmem>>, vector<4x256xbf16>,
    %c0_29 = arith.constant 0 : index
    %c129 = arith.constant 129 : index
    %52 = vector.load %arg11[%c0_29, %c129] : memref<16x512xbf16, #tpu.memory_space<vmem>>, vector<4x256xbf16>
    %cst_30 = arith.constant 0.000000e+00 : bf16
    %53 = vector.broadcast %cst_30 : bf16 to vector<4x256xbf16>
    %54 = vector.shape_cast %20 : vector<1x256xi1> to vector<1x256xi1>
    %55 = vector.broadcast %54 : vector<1x256xi1> to vector<4x256xi1>
    %56 = arith.select %55, %52, %53 : vector<4x256xi1>, vector<4x256xbf16>
    %c80 = arith.constant 80 : index
    %c0_31 = arith.constant 0 : index
    %57 = vector.load %arg12[%c80, %c0_31] : memref<144x256xbf16, #tpu.memory_space<vmem>>, vector<4x256xbf16>
    tpu.vector_store %arg12[%c80, %c0_31], %56 {strides = array<i32>} : memref<144x256xbf16, #tpu.memory_space<vmem>>, vector<4x256xbf16>,
    %c0_32 = arith.constant 0 : index
    %c143 = arith.constant 143 : index
    %58 = vector.load %arg11[%c0_32, %c143] : memref<16x512xbf16, #tpu.memory_space<vmem>>, vector<4x256xbf16>
    %cst_33 = arith.constant 0.000000e+00 : bf16
    %59 = vector.broadcast %cst_33 : bf16 to vector<4x256xbf16>
    %60 = vector.shape_cast %18 : vector<1x256xi1> to vector<1x256xi1>
    %61 = vector.broadcast %60 : vector<1x256xi1> to vector<4x256xi1>
    %62 = arith.select %61, %58, %59 : vector<4x256xi1>, vector<4x256xbf16>
    %c96 = arith.constant 96 : index
    %c0_34 = arith.constant 0 : index
    %63 = vector.load %arg12[%c96, %c0_34] : memref<144x256xbf16, #tpu.memory_space<vmem>>, vector<4x256xbf16>
    tpu.vector_store %arg12[%c96, %c0_34], %62 {strides = array<i32>} : memref<144x256xbf16, #tpu.memory_space<vmem>>, vector<4x256xbf16>,
    %c0_35 = arith.constant 0 : index
    %c144 = arith.constant 144 : index
    %64 = vector.load %arg11[%c0_35, %c144] : memref<16x512xbf16, #tpu.memory_space<vmem>>, vector<4x256xbf16>
    %c112_36 = arith.constant 112 : index
    %c0_37 = arith.constant 0 : index
    %65 = vector.load %arg12[%c112_36, %c0_37] : memref<144x256xbf16, #tpu.memory_space<vmem>>, vector<4x256xbf16>
    tpu.vector_store %arg12[%c112_36, %c0_37], %64 {strides = array<i32>} : memref<144x256xbf16, #tpu.memory_space<vmem>>, vector<4x256xbf16>,
    %c0_38 = arith.constant 0 : index
    %c145 = arith.constant 145 : index
    %66 = vector.load %arg11[%c0_38, %c145] : memref<16x512xbf16, #tpu.memory_space<vmem>>, vector<4x256xbf16>
    %cst_39 = arith.constant 0.000000e+00 : bf16
    %67 = vector.broadcast %cst_39 : bf16 to vector<4x256xbf16>
    %68 = vector.shape_cast %20 : vector<1x256xi1> to vector<1x256xi1>
    %69 = vector.broadcast %68 : vector<1x256xi1> to vector<4x256xi1>
    %70 = arith.select %69, %66, %67 : vector<4x256xi1>, vector<4x256xbf16>
    %c128_40 = arith.constant 128 : index
    %c0_41 = arith.constant 0 : index
    %71 = vector.load %arg12[%c128_40, %c0_41] : memref<144x256xbf16, #tpu.memory_space<vmem>>, vector<4x256xbf16>
    tpu.vector_store %arg12[%c128_40, %c0_41], %70 {strides = array<i32>} : memref<144x256xbf16, #tpu.memory_space<vmem>>, vector<4x256xbf16>,
    %c0_42 = arith.constant 0 : index
    %c0_43 = arith.constant 0 : index
    %72 = vector.load %arg2[%c0_42, %c0_43] : memref<8x144xbf16, #tpu.memory_space<vmem>>, vector<8x144xbf16>
    %c0_44 = arith.constant 0 : index
    %c0_45 = arith.constant 0 : index
    %73 = vector.load %arg12[%c0_44, %c0_45] : memref<144x256xbf16, #tpu.memory_space<vmem>>, vector<144x256xbf16>
    %cst_46 = arith.constant dense<0.000000e+00> : vector<8x256xf32>
    %74 = tpu.matmul %72, %73, %cst_46 {dimension_numbers = #tpu.dot_dimension_numbers<[1], [0], [0], [1], [0, 0, 1, 1], [], []>} : vector<8x144xbf16>, vector<144x256xbf16>, vector<8x256xf32> -> vector<8x256xf32>
    %c0_47 = arith.constant 0 : index
    %c0_48 = arith.constant 0 : index
    %75 = vector.load %arg3[%c0_47, %c0_48] : memref<8x1xf32, #tpu.memory_space<vmem>>, vector<8x1xf32>
    %76 = vector.broadcast %75 : vector<8x1xf32> to vector<8x256xf32>
    %77 = arith.addf %74, %76 : vector<8x256xf32>
    %cst_49 = arith.constant 0.000000e+00 : f32
    %78 = vector.broadcast %cst_49 : f32 to vector<8x256xf32>
    %79 = arith.maximumf %77, %78 : vector<8x256xf32>
    %80 = arith.truncf %79 : vector<8x256xf32> to vector<8x256xbf16>
    %c0_50 = arith.constant 0 : index
    %c0_51 = arith.constant 0 : index
    %c0_52 = arith.constant 0 : index
    %81 = vector.load %arg8[%c0_50, %c0_51, %c0_52] : memref<1x8x256xbf16, #tpu.memory_space<vmem>>, vector<1x8x256xbf16>
    %82 = vector.shape_cast %81 : vector<1x8x256xbf16> to vector<8x256xbf16>
    %83 = vector.shape_cast %80 : vector<8x256xbf16> to vector<1x8x256xbf16>
    tpu.vector_store %arg8[%c0_50, %c0_51, %c0_52], %83 {strides = array<i32>} : memref<1x8x256xbf16, #tpu.memory_space<vmem>>, vector<1x8x256xbf16>,
    %cst_53 = arith.constant 0.000000e+00 : bf16
    %84 = vector.broadcast %cst_53 : bf16 to vector<8x128xbf16>
    %c0_54 = arith.constant 0 : index
    %c0_55 = arith.constant 0 : index
    %85 = vector.load %arg11[%c0_54, %c0_55] : memref<16x512xbf16, #tpu.memory_space<vmem>>, vector<8x128xbf16>
    tpu.vector_store %arg11[%c0_54, %c0_55], %84 {strides = array<i32>} : memref<16x512xbf16, #tpu.memory_space<vmem>>, vector<8x128xbf16>,
    %c0_56 = arith.constant 0 : index
    %c128_57 = arith.constant 128 : index
    %86 = vector.load %arg11[%c0_56, %c128_57] : memref<16x512xbf16, #tpu.memory_space<vmem>>, vector<8x256xbf16>
    tpu.vector_store %arg11[%c0_56, %c128_57], %80 {strides = array<i32>} : memref<16x512xbf16, #tpu.memory_space<vmem>>, vector<8x256xbf16>,
    %cst_58 = arith.constant 0.000000e+00 : bf16
    %87 = vector.broadcast %cst_58 : bf16 to vector<8x128xbf16>
    %c0_59 = arith.constant 0 : index
    %c384_60 = arith.constant 384 : index
    %88 = vector.load %arg11[%c0_59, %c384_60] : memref<16x512xbf16, #tpu.memory_space<vmem>>, vector<8x128xbf16>
    tpu.vector_store %arg11[%c0_59, %c384_60], %87 {strides = array<i32>} : memref<16x512xbf16, #tpu.memory_space<vmem>>, vector<8x128xbf16>,
    %cst_61 = arith.constant 0.000000e+00 : bf16
    %89 = vector.broadcast %cst_61 : bf16 to vector<144x256xbf16>
    %c0_62 = arith.constant 0 : index
    %c0_63 = arith.constant 0 : index
    %90 = vector.load %arg12[%c0_62, %c0_63] : memref<144x256xbf16, #tpu.memory_space<vmem>>, vector<144x256xbf16>
    tpu.vector_store %arg12[%c0_62, %c0_63], %89 {strides = array<i32>} : memref<144x256xbf16, #tpu.memory_space<vmem>>, vector<144x256xbf16>,
    %c0_64 = arith.constant 0 : index
    %c111_65 = arith.constant 111 : index
    %91 = vector.load %arg11[%c0_64, %c111_65] : memref<16x512xbf16, #tpu.memory_space<vmem>>, vector<8x256xbf16>
    %cst_66 = arith.constant 0.000000e+00 : bf16
    %92 = vector.broadcast %cst_66 : bf16 to vector<8x256xbf16>
    %93 = vector.shape_cast %18 : vector<1x256xi1> to vector<1x256xi1>
    %94 = vector.broadcast %93 : vector<1x256xi1> to vector<8x256xi1>
    %95 = arith.select %94, %91, %92 : vector<8x256xi1>, vector<8x256xbf16>
    %c0_67 = arith.constant 0 : index
    %c0_68 = arith.constant 0 : index
    %96 = vector.load %arg12[%c0_67, %c0_68] : memref<144x256xbf16, #tpu.memory_space<vmem>>, vector<8x256xbf16>
    tpu.vector_store %arg12[%c0_67, %c0_68], %95 {strides = array<i32>} : memref<144x256xbf16, #tpu.memory_space<vmem>>, vector<8x256xbf16>,
    %c0_69 = arith.constant 0 : index
    %c112_70 = arith.constant 112 : index
    %97 = vector.load %arg11[%c0_69, %c112_70] : memref<16x512xbf16, #tpu.memory_space<vmem>>, vector<8x256xbf16>
    %c16_71 = arith.constant 16 : index
    %c0_72 = arith.constant 0 : index
    %98 = vector.load %arg12[%c16_71, %c0_72] : memref<144x256xbf16, #tpu.memory_space<vmem>>, vector<8x256xbf16>
    tpu.vector_store %arg12[%c16_71, %c0_72], %97 {strides = array<i32>} : memref<144x256xbf16, #tpu.memory_space<vmem>>, vector<8x256xbf16>,
    %c0_73 = arith.constant 0 : index
    %c113_74 = arith.constant 113 : index
    %99 = vector.load %arg11[%c0_73, %c113_74] : memref<16x512xbf16, #tpu.memory_space<vmem>>, vector<8x256xbf16>
    %cst_75 = arith.constant 0.000000e+00 : bf16
    %100 = vector.broadcast %cst_75 : bf16 to vector<8x256xbf16>
    %101 = vector.shape_cast %20 : vector<1x256xi1> to vector<1x256xi1>
    %102 = vector.broadcast %101 : vector<1x256xi1> to vector<8x256xi1>
    %103 = arith.select %102, %99, %100 : vector<8x256xi1>, vector<8x256xbf16>
    %c32_76 = arith.constant 32 : index
    %c0_77 = arith.constant 0 : index
    %104 = vector.load %arg12[%c32_76, %c0_77] : memref<144x256xbf16, #tpu.memory_space<vmem>>, vector<8x256xbf16>
    tpu.vector_store %arg12[%c32_76, %c0_77], %103 {strides = array<i32>} : memref<144x256xbf16, #tpu.memory_space<vmem>>, vector<8x256xbf16>,
    %c0_78 = arith.constant 0 : index
    %c127_79 = arith.constant 127 : index
    %105 = vector.load %arg11[%c0_78, %c127_79] : memref<16x512xbf16, #tpu.memory_space<vmem>>, vector<8x256xbf16>
    %cst_80 = arith.constant 0.000000e+00 : bf16
    %106 = vector.broadcast %cst_80 : bf16 to vector<8x256xbf16>
    %107 = vector.shape_cast %18 : vector<1x256xi1> to vector<1x256xi1>
    %108 = vector.broadcast %107 : vector<1x256xi1> to vector<8x256xi1>
    %109 = arith.select %108, %105, %106 : vector<8x256xi1>, vector<8x256xbf16>
    %c48_81 = arith.constant 48 : index
    %c0_82 = arith.constant 0 : index
    %110 = vector.load %arg12[%c48_81, %c0_82] : memref<144x256xbf16, #tpu.memory_space<vmem>>, vector<8x256xbf16>
    tpu.vector_store %arg12[%c48_81, %c0_82], %109 {strides = array<i32>} : memref<144x256xbf16, #tpu.memory_space<vmem>>, vector<8x256xbf16>,
    %c0_83 = arith.constant 0 : index
    %c128_84 = arith.constant 128 : index
    %111 = vector.load %arg11[%c0_83, %c128_84] : memref<16x512xbf16, #tpu.memory_space<vmem>>, vector<8x256xbf16>
    %c64_85 = arith.constant 64 : index
    %c0_86 = arith.constant 0 : index
    %112 = vector.load %arg12[%c64_85, %c0_86] : memref<144x256xbf16, #tpu.memory_space<vmem>>, vector<8x256xbf16>
    tpu.vector_store %arg12[%c64_85, %c0_86], %111 {strides = array<i32>} : memref<144x256xbf16, #tpu.memory_space<vmem>>, vector<8x256xbf16>,
    %c0_87 = arith.constant 0 : index
    %c129_88 = arith.constant 129 : index
    %113 = vector.load %arg11[%c0_87, %c129_88] : memref<16x512xbf16, #tpu.memory_space<vmem>>, vector<8x256xbf16>
    %cst_89 = arith.constant 0.000000e+00 : bf16
    %114 = vector.broadcast %cst_89 : bf16 to vector<8x256xbf16>
    %115 = vector.shape_cast %20 : vector<1x256xi1> to vector<1x256xi1>
    %116 = vector.broadcast %115 : vector<1x256xi1> to vector<8x256xi1>
    %117 = arith.select %116, %113, %114 : vector<8x256xi1>, vector<8x256xbf16>
    %c80_90 = arith.constant 80 : index
    %c0_91 = arith.constant 0 : index
    %118 = vector.load %arg12[%c80_90, %c0_91] : memref<144x256xbf16, #tpu.memory_space<vmem>>, vector<8x256xbf16>
    tpu.vector_store %arg12[%c80_90, %c0_91], %117 {strides = array<i32>} : memref<144x256xbf16, #tpu.memory_space<vmem>>, vector<8x256xbf16>,
    %c0_92 = arith.constant 0 : index
    %c143_93 = arith.constant 143 : index
    %119 = vector.load %arg11[%c0_92, %c143_93] : memref<16x512xbf16, #tpu.memory_space<vmem>>, vector<8x256xbf16>
    %cst_94 = arith.constant 0.000000e+00 : bf16
    %120 = vector.broadcast %cst_94 : bf16 to vector<8x256xbf16>
    %121 = vector.shape_cast %18 : vector<1x256xi1> to vector<1x256xi1>
    %122 = vector.broadcast %121 : vector<1x256xi1> to vector<8x256xi1>
    %123 = arith.select %122, %119, %120 : vector<8x256xi1>, vector<8x256xbf16>
    %c96_95 = arith.constant 96 : index
    %c0_96 = arith.constant 0 : index
    %124 = vector.load %arg12[%c96_95, %c0_96] : memref<144x256xbf16, #tpu.memory_space<vmem>>, vector<8x256xbf16>
    tpu.vector_store %arg12[%c96_95, %c0_96], %123 {strides = array<i32>} : memref<144x256xbf16, #tpu.memory_space<vmem>>, vector<8x256xbf16>,
    %c0_97 = arith.constant 0 : index
    %c144_98 = arith.constant 144 : index
    %125 = vector.load %arg11[%c0_97, %c144_98] : memref<16x512xbf16, #tpu.memory_space<vmem>>, vector<8x256xbf16>
    %c112_99 = arith.constant 112 : index
    %c0_100 = arith.constant 0 : index
    %126 = vector.load %arg12[%c112_99, %c0_100] : memref<144x256xbf16, #tpu.memory_space<vmem>>, vector<8x256xbf16>
    tpu.vector_store %arg12[%c112_99, %c0_100], %125 {strides = array<i32>} : memref<144x256xbf16, #tpu.memory_space<vmem>>, vector<8x256xbf16>,
    %c0_101 = arith.constant 0 : index
    %c145_102 = arith.constant 145 : index
    %127 = vector.load %arg11[%c0_101, %c145_102] : memref<16x512xbf16, #tpu.memory_space<vmem>>, vector<8x256xbf16>
    %cst_103 = arith.constant 0.000000e+00 : bf16
    %128 = vector.broadcast %cst_103 : bf16 to vector<8x256xbf16>
    %129 = vector.shape_cast %20 : vector<1x256xi1> to vector<1x256xi1>
    %130 = vector.broadcast %129 : vector<1x256xi1> to vector<8x256xi1>
    %131 = arith.select %130, %127, %128 : vector<8x256xi1>, vector<8x256xbf16>
    %c128_104 = arith.constant 128 : index
    %c0_105 = arith.constant 0 : index
    %132 = vector.load %arg12[%c128_104, %c0_105] : memref<144x256xbf16, #tpu.memory_space<vmem>>, vector<8x256xbf16>
    tpu.vector_store %arg12[%c128_104, %c0_105], %131 {strides = array<i32>} : memref<144x256xbf16, #tpu.memory_space<vmem>>, vector<8x256xbf16>,
    %c0_106 = arith.constant 0 : index
    %c0_107 = arith.constant 0 : index
    %133 = vector.load %arg4[%c0_106, %c0_107] : memref<16x144xbf16, #tpu.memory_space<vmem>>, vector<16x144xbf16>
    %c0_108 = arith.constant 0 : index
    %c0_109 = arith.constant 0 : index
    %134 = vector.load %arg12[%c0_108, %c0_109] : memref<144x256xbf16, #tpu.memory_space<vmem>>, vector<144x256xbf16>
    %cst_110 = arith.constant dense<0.000000e+00> : vector<16x256xf32>
    %135 = tpu.matmul %133, %134, %cst_110 {dimension_numbers = #tpu.dot_dimension_numbers<[1], [0], [0], [1], [0, 0, 1, 1], [], []>} : vector<16x144xbf16>, vector<144x256xbf16>, vector<16x256xf32> -> vector<16x256xf32>
    %c0_111 = arith.constant 0 : index
    %c0_112 = arith.constant 0 : index
    %136 = vector.load %arg5[%c0_111, %c0_112] : memref<16x1xf32, #tpu.memory_space<vmem>>, vector<16x1xf32>
    %137 = vector.broadcast %136 : vector<16x1xf32> to vector<16x256xf32>
    %138 = arith.addf %135, %137 : vector<16x256xf32>
    %cst_113 = arith.constant 0.000000e+00 : f32
    %139 = vector.broadcast %cst_113 : f32 to vector<16x256xf32>
    %140 = arith.maximumf %138, %139 : vector<16x256xf32>
    %141 = arith.truncf %140 : vector<16x256xf32> to vector<16x256xbf16>
    %c0_114 = arith.constant 0 : index
    %c0_115 = arith.constant 0 : index
    %c0_116 = arith.constant 0 : index
    %142 = vector.load %arg9[%c0_114, %c0_115, %c0_116] : memref<1x16x256xbf16, #tpu.memory_space<vmem>>, vector<1x16x256xbf16>
    %143 = vector.shape_cast %142 : vector<1x16x256xbf16> to vector<16x256xbf16>
    %144 = vector.shape_cast %141 : vector<16x256xbf16> to vector<1x16x256xbf16>
    tpu.vector_store %arg9[%c0_114, %c0_115, %c0_116], %144 {strides = array<i32>} : memref<1x16x256xbf16, #tpu.memory_space<vmem>>, vector<1x16x256xbf16>,
    %cst_117 = arith.constant 0.000000e+00 : bf16
    %145 = vector.broadcast %cst_117 : bf16 to vector<16x128xbf16>
    %c0_118 = arith.constant 0 : index
    %c0_119 = arith.constant 0 : index
    %146 = vector.load %arg11[%c0_118, %c0_119] : memref<16x512xbf16, #tpu.memory_space<vmem>>, vector<16x128xbf16>
    tpu.vector_store %arg11[%c0_118, %c0_119], %145 {strides = array<i32>} : memref<16x512xbf16, #tpu.memory_space<vmem>>, vector<16x128xbf16>,
    %c0_120 = arith.constant 0 : index
    %c128_121 = arith.constant 128 : index
    %147 = vector.load %arg11[%c0_120, %c128_121] : memref<16x512xbf16, #tpu.memory_space<vmem>>, vector<16x256xbf16>
    tpu.vector_store %arg11[%c0_120, %c128_121], %141 {strides = array<i32>} : memref<16x512xbf16, #tpu.memory_space<vmem>>, vector<16x256xbf16>,
    %cst_122 = arith.constant 0.000000e+00 : bf16
    %148 = vector.broadcast %cst_122 : bf16 to vector<16x128xbf16>
    %c0_123 = arith.constant 0 : index
    %c384_124 = arith.constant 384 : index
    %149 = vector.load %arg11[%c0_123, %c384_124] : memref<16x512xbf16, #tpu.memory_space<vmem>>, vector<16x128xbf16>
    tpu.vector_store %arg11[%c0_123, %c384_124], %148 {strides = array<i32>} : memref<16x512xbf16, #tpu.memory_space<vmem>>, vector<16x128xbf16>,
    %c0_125 = arith.constant 0 : index
    %c111_126 = arith.constant 111 : index
    %150 = vector.load %arg11[%c0_125, %c111_126] : memref<16x512xbf16, #tpu.memory_space<vmem>>, vector<16x256xbf16>
    %cst_127 = arith.constant 0.000000e+00 : bf16
    %151 = vector.broadcast %cst_127 : bf16 to vector<16x256xbf16>
    %152 = vector.shape_cast %18 : vector<1x256xi1> to vector<1x256xi1>
    %153 = vector.broadcast %152 : vector<1x256xi1> to vector<16x256xi1>
    %154 = arith.select %153, %150, %151 : vector<16x256xi1>, vector<16x256xbf16>
    %c0_128 = arith.constant 0 : index
    %c0_129 = arith.constant 0 : index
    %155 = vector.load %arg12[%c0_128, %c0_129] : memref<144x256xbf16, #tpu.memory_space<vmem>>, vector<16x256xbf16>
    tpu.vector_store %arg12[%c0_128, %c0_129], %154 {strides = array<i32>} : memref<144x256xbf16, #tpu.memory_space<vmem>>, vector<16x256xbf16>,
    %c0_130 = arith.constant 0 : index
    %c112_131 = arith.constant 112 : index
    %156 = vector.load %arg11[%c0_130, %c112_131] : memref<16x512xbf16, #tpu.memory_space<vmem>>, vector<16x256xbf16>
    %c16_132 = arith.constant 16 : index
    %c0_133 = arith.constant 0 : index
    %157 = vector.load %arg12[%c16_132, %c0_133] : memref<144x256xbf16, #tpu.memory_space<vmem>>, vector<16x256xbf16>
    tpu.vector_store %arg12[%c16_132, %c0_133], %156 {strides = array<i32>} : memref<144x256xbf16, #tpu.memory_space<vmem>>, vector<16x256xbf16>,
    %c0_134 = arith.constant 0 : index
    %c113_135 = arith.constant 113 : index
    %158 = vector.load %arg11[%c0_134, %c113_135] : memref<16x512xbf16, #tpu.memory_space<vmem>>, vector<16x256xbf16>
    %cst_136 = arith.constant 0.000000e+00 : bf16
    %159 = vector.broadcast %cst_136 : bf16 to vector<16x256xbf16>
    %160 = vector.shape_cast %20 : vector<1x256xi1> to vector<1x256xi1>
    %161 = vector.broadcast %160 : vector<1x256xi1> to vector<16x256xi1>
    %162 = arith.select %161, %158, %159 : vector<16x256xi1>, vector<16x256xbf16>
    %c32_137 = arith.constant 32 : index
    %c0_138 = arith.constant 0 : index
    %163 = vector.load %arg12[%c32_137, %c0_138] : memref<144x256xbf16, #tpu.memory_space<vmem>>, vector<16x256xbf16>
    tpu.vector_store %arg12[%c32_137, %c0_138], %162 {strides = array<i32>} : memref<144x256xbf16, #tpu.memory_space<vmem>>, vector<16x256xbf16>,
    %c0_139 = arith.constant 0 : index
    %c127_140 = arith.constant 127 : index
    %164 = vector.load %arg11[%c0_139, %c127_140] : memref<16x512xbf16, #tpu.memory_space<vmem>>, vector<16x256xbf16>
    %cst_141 = arith.constant 0.000000e+00 : bf16
    %165 = vector.broadcast %cst_141 : bf16 to vector<16x256xbf16>
    %166 = vector.shape_cast %18 : vector<1x256xi1> to vector<1x256xi1>
    %167 = vector.broadcast %166 : vector<1x256xi1> to vector<16x256xi1>
    %168 = arith.select %167, %164, %165 : vector<16x256xi1>, vector<16x256xbf16>
    %c48_142 = arith.constant 48 : index
    %c0_143 = arith.constant 0 : index
    %169 = vector.load %arg12[%c48_142, %c0_143] : memref<144x256xbf16, #tpu.memory_space<vmem>>, vector<16x256xbf16>
    tpu.vector_store %arg12[%c48_142, %c0_143], %168 {strides = array<i32>} : memref<144x256xbf16, #tpu.memory_space<vmem>>, vector<16x256xbf16>,
    %c0_144 = arith.constant 0 : index
    %c128_145 = arith.constant 128 : index
    %170 = vector.load %arg11[%c0_144, %c128_145] : memref<16x512xbf16, #tpu.memory_space<vmem>>, vector<16x256xbf16>
    %c64_146 = arith.constant 64 : index
    %c0_147 = arith.constant 0 : index
    %171 = vector.load %arg12[%c64_146, %c0_147] : memref<144x256xbf16, #tpu.memory_space<vmem>>, vector<16x256xbf16>
    tpu.vector_store %arg12[%c64_146, %c0_147], %170 {strides = array<i32>} : memref<144x256xbf16, #tpu.memory_space<vmem>>, vector<16x256xbf16>,
    %c0_148 = arith.constant 0 : index
    %c129_149 = arith.constant 129 : index
    %172 = vector.load %arg11[%c0_148, %c129_149] : memref<16x512xbf16, #tpu.memory_space<vmem>>, vector<16x256xbf16>
    %cst_150 = arith.constant 0.000000e+00 : bf16
    %173 = vector.broadcast %cst_150 : bf16 to vector<16x256xbf16>
    %174 = vector.shape_cast %20 : vector<1x256xi1> to vector<1x256xi1>
    %175 = vector.broadcast %174 : vector<1x256xi1> to vector<16x256xi1>
    %176 = arith.select %175, %172, %173 : vector<16x256xi1>, vector<16x256xbf16>
    %c80_151 = arith.constant 80 : index
    %c0_152 = arith.constant 0 : index
    %177 = vector.load %arg12[%c80_151, %c0_152] : memref<144x256xbf16, #tpu.memory_space<vmem>>, vector<16x256xbf16>
    tpu.vector_store %arg12[%c80_151, %c0_152], %176 {strides = array<i32>} : memref<144x256xbf16, #tpu.memory_space<vmem>>, vector<16x256xbf16>,
    %c0_153 = arith.constant 0 : index
    %c143_154 = arith.constant 143 : index
    %178 = vector.load %arg11[%c0_153, %c143_154] : memref<16x512xbf16, #tpu.memory_space<vmem>>, vector<16x256xbf16>
    %cst_155 = arith.constant 0.000000e+00 : bf16
    %179 = vector.broadcast %cst_155 : bf16 to vector<16x256xbf16>
    %180 = vector.shape_cast %18 : vector<1x256xi1> to vector<1x256xi1>
    %181 = vector.broadcast %180 : vector<1x256xi1> to vector<16x256xi1>
    %182 = arith.select %181, %178, %179 : vector<16x256xi1>, vector<16x256xbf16>
    %c96_156 = arith.constant 96 : index
    %c0_157 = arith.constant 0 : index
    %183 = vector.load %arg12[%c96_156, %c0_157] : memref<144x256xbf16, #tpu.memory_space<vmem>>, vector<16x256xbf16>
    tpu.vector_store %arg12[%c96_156, %c0_157], %182 {strides = array<i32>} : memref<144x256xbf16, #tpu.memory_space<vmem>>, vector<16x256xbf16>,
    %c0_158 = arith.constant 0 : index
    %c144_159 = arith.constant 144 : index
    %184 = vector.load %arg11[%c0_158, %c144_159] : memref<16x512xbf16, #tpu.memory_space<vmem>>, vector<16x256xbf16>
    %c112_160 = arith.constant 112 : index
    %c0_161 = arith.constant 0 : index
    %185 = vector.load %arg12[%c112_160, %c0_161] : memref<144x256xbf16, #tpu.memory_space<vmem>>, vector<16x256xbf16>
    tpu.vector_store %arg12[%c112_160, %c0_161], %184 {strides = array<i32>} : memref<144x256xbf16, #tpu.memory_space<vmem>>, vector<16x256xbf16>,
    %c0_162 = arith.constant 0 : index
    %c145_163 = arith.constant 145 : index
    %186 = vector.load %arg11[%c0_162, %c145_163] : memref<16x512xbf16, #tpu.memory_space<vmem>>, vector<16x256xbf16>
    %cst_164 = arith.constant 0.000000e+00 : bf16
    %187 = vector.broadcast %cst_164 : bf16 to vector<16x256xbf16>
    %188 = vector.shape_cast %20 : vector<1x256xi1> to vector<1x256xi1>
    %189 = vector.broadcast %188 : vector<1x256xi1> to vector<16x256xi1>
    %190 = arith.select %189, %186, %187 : vector<16x256xi1>, vector<16x256xbf16>
    %c128_165 = arith.constant 128 : index
    %c0_166 = arith.constant 0 : index
    %191 = vector.load %arg12[%c128_165, %c0_166] : memref<144x256xbf16, #tpu.memory_space<vmem>>, vector<16x256xbf16>
    tpu.vector_store %arg12[%c128_165, %c0_166], %190 {strides = array<i32>} : memref<144x256xbf16, #tpu.memory_space<vmem>>, vector<16x256xbf16>,
    %c0_167 = arith.constant 0 : index
    %c0_168 = arith.constant 0 : index
    %192 = vector.load %arg6[%c0_167, %c0_168] : memref<32x144xbf16, #tpu.memory_space<vmem>>, vector<32x144xbf16>
    %c0_169 = arith.constant 0 : index
    %c0_170 = arith.constant 0 : index
    %193 = vector.load %arg12[%c0_169, %c0_170] : memref<144x256xbf16, #tpu.memory_space<vmem>>, vector<144x256xbf16>
    %cst_171 = arith.constant dense<0.000000e+00> : vector<32x256xf32>
    %194 = tpu.matmul %192, %193, %cst_171 {dimension_numbers = #tpu.dot_dimension_numbers<[1], [0], [0], [1], [0, 0, 1, 1], [], []>} : vector<32x144xbf16>, vector<144x256xbf16>, vector<32x256xf32> -> vector<32x256xf32>
    %c0_172 = arith.constant 0 : index
    %c0_173 = arith.constant 0 : index
    %195 = vector.load %arg7[%c0_172, %c0_173] : memref<32x1xf32, #tpu.memory_space<vmem>>, vector<32x1xf32>
    %196 = vector.broadcast %195 : vector<32x1xf32> to vector<32x256xf32>
    %197 = arith.addf %194, %196 : vector<32x256xf32>
    %cst_174 = arith.constant 0.000000e+00 : f32
    %198 = vector.broadcast %cst_174 : f32 to vector<32x256xf32>
    %199 = arith.maximumf %197, %198 : vector<32x256xf32>
    %200 = arith.truncf %199 : vector<32x256xf32> to vector<32x256xbf16>
    %c0_175 = arith.constant 0 : index
    %c0_176 = arith.constant 0 : index
    %c0_177 = arith.constant 0 : index
    %201 = vector.load %arg10[%c0_175, %c0_176, %c0_177] : memref<1x32x256xbf16, #tpu.memory_space<vmem>>, vector<1x32x256xbf16>
    %202 = vector.shape_cast %201 : vector<1x32x256xbf16> to vector<32x256xbf16>
    %203 = vector.shape_cast %200 : vector<32x256xbf16> to vector<1x32x256xbf16>
    tpu.vector_store %arg10[%c0_175, %c0_176, %c0_177], %203 {strides = array<i32>} : memref<1x32x256xbf16, #tpu.memory_space<vmem>>, vector<1x32x256xbf16>,
    return
  }
  func.func @transform_0(%arg0: i32) -> (i32, i32, i32) {
    %c0_i32 = arith.constant 0 : i32
    %c0_i32_0 = arith.constant 0 : i32
    %c0_i32_1 = arith.constant 0 : i32
    return %arg0, %c0_i32, %c0_i32_0 : i32, i32, i32
  }
  func.func @transform_1(%arg0: i32) -> (i32, i32) {
    %c0_i32 = arith.constant 0 : i32
    %c0_i32_0 = arith.constant 0 : i32
    %c0_i32_1 = arith.constant 0 : i32
    return %c0_i32, %c0_i32_0 : i32, i32
  }
  func.func @transform_2(%arg0: i32) -> (i32, i32) {
    %c0_i32 = arith.constant 0 : i32
    %c0_i32_0 = arith.constant 0 : i32
    %c0_i32_1 = arith.constant 0 : i32
    return %c0_i32, %c0_i32_0 : i32, i32
  }
  func.func @transform_3(%arg0: i32) -> (i32, i32) {
    %c0_i32 = arith.constant 0 : i32
    %c0_i32_0 = arith.constant 0 : i32
    %c0_i32_1 = arith.constant 0 : i32
    return %c0_i32, %c0_i32_0 : i32, i32
  }
  func.func @transform_4(%arg0: i32) -> (i32, i32) {
    %c0_i32 = arith.constant 0 : i32
    %c0_i32_0 = arith.constant 0 : i32
    %c0_i32_1 = arith.constant 0 : i32
    return %c0_i32, %c0_i32_0 : i32, i32
  }
  func.func @transform_5(%arg0: i32) -> (i32, i32) {
    %c0_i32 = arith.constant 0 : i32
    %c0_i32_0 = arith.constant 0 : i32
    %c0_i32_1 = arith.constant 0 : i32
    return %c0_i32, %c0_i32_0 : i32, i32
  }
  func.func @transform_6(%arg0: i32) -> (i32, i32) {
    %c0_i32 = arith.constant 0 : i32
    %c0_i32_0 = arith.constant 0 : i32
    %c0_i32_1 = arith.constant 0 : i32
    return %c0_i32, %c0_i32_0 : i32, i32
  }
  func.func @transform_7(%arg0: i32) -> (i32, i32, i32) {
    %c0_i32 = arith.constant 0 : i32
    %c0_i32_0 = arith.constant 0 : i32
    %c0_i32_1 = arith.constant 0 : i32
    return %arg0, %c0_i32, %c0_i32_0 : i32, i32, i32
  }
  func.func @transform_8(%arg0: i32) -> (i32, i32, i32) {
    %c0_i32 = arith.constant 0 : i32
    %c0_i32_0 = arith.constant 0 : i32
    %c0_i32_1 = arith.constant 0 : i32
    return %arg0, %c0_i32, %c0_i32_0 : i32, i32, i32
  }
  func.func @transform_9(%arg0: i32) -> (i32, i32, i32) {
    %c0_i32 = arith.constant 0 : i32
    %c0_i32_0 = arith.constant 0 : i32
    %c0_i32_1 = arith.constant 0 : i32
    return %arg0, %c0_i32, %c0_i32_0 : i32, i32, i32
  }
}

</mosaic_0001>

<bundles_post_ra>
// kernel: forward.1
= control target key start
LH: loop header
LB: loop body
LE: loop exit
PB: predicated region body
PF: predicated region fallthrough
CT: control target
= control target key end

     0   :  { %s2264_s30 = smov 0   ;;  %s2843_s0 = inlined_call_operand.vmem [shape: bf16[2,4,256], index: 0, kind: input, shape index: {}]   ;;  %s2844_s1 = inlined_call_operand.vmem [shape: bf16[8,144], index: 1, kind: input, shape index: {}]   ;;  %s2845_s2 = inlined_call_operand.vmem [shape: f32[8,1], index: 2, kind: input, shape index: {}]   ;;  %s2846_s3 = inlined_call_operand.vmem [shape: bf16[16,144], index: 3, kind: input, shape index: {}]   ;;  %s2847_s4 = inlined_call_operand.vmem [shape: f32[16,1], index: 4, kind: input, shape index: {}]   ;;  %s2848_s5 = inlined_call_operand.vmem [shape: bf16[32,144], index: 5, kind: input, shape index: {}]   ;;  %s2849_s6 = inlined_call_operand.vmem [shape: f32[32,1], index: 6, kind: input, shape index: {}]   ;;  %s2850_s7 = inlined_call_operand.vmem [shape: bf16[2,8,256], index: 7, kind: output, shape index: {0}]   ;;  %s2851_s8 = inlined_call_operand.vmem [shape: bf16[2,16,256], index: 8, kind: output, shape index: {1}]   ;;  %s2852_s9 = inlined_call_operand.vmem [shape: bf16[2,32,256], index: 9, kind: output, shape index: {2}]  }
   0x1 LB: > { %s1830_s10 = sadd.s32 4294967295, %s2203_s30   ;;  %p1834_p0 = scmp.ge.s32.totalorder %s2203_s30, 1  ;;  %s2203_s30 = sphi %s2264_s30, %s20_s30  }
   0x2   : > { %p292_p1 = scmp.lt.s32.totalorder %s2203_s30, 3 }
   0x4   : > { %p293_p2 = pnand %p1834_p0, %p292_p1 }
   0x5   : > { %s2206_s11 = smov (!%p293_p2), 127   ;;  %s2207_s12 = smov (!%p293_p2), 15  }
   0x6   : > { %296 = sbr.rel (%p293_p2) target bundleno = 1139 (0x473), region = 48  ;;  %s2208_s13 = smov (!%p293_p2), 111  }
   0x7   : > { %s2209_s14 = smov (!%p293_p2), 113   ;;  %s2210_s15 = smov (!%p293_p2), 1  }
   0x8   : > { %s2211_s16 = smov (!%p293_p2), 17   ;;  %s2212_s17 = smov (!%p293_p2), 112  }
   0x9   : > { %p338_p3 = scmp.lt.s32.totalorder (!%p293_p2), %s1830_s10, 1  ;;  %s2213_s22 = smov (!%p293_p2), 16  }
   0xb   : > { %v361_v0 = vlaneseq  ;;  %v2205_v1 = vmov 0   ;;  %s2918_s10 = smov (!%p338_p3, %s1830_s10), 1  ;;  %vm2854_vm6 = vcmask 121856   ;;  %vm2855_vm7 = vcmask 1039360  }
   0xc   : > { %393 = vst [vmem:[#allocation2] sm:$0x3] %v2205_v1  ;;  %2174 = vset.pattern.permute.xlu1 %v2205_v1  ;;  %2175 = vset.pattern.permute.xlu0 %v2205_v1  ;;  %s2093_s18 = sshll.u32 %s2918_s10, 2  ;;  %v2346_v27 = vunpack.c.l.b16 %v2205_v1  ;;  %v2349_v28 = vunpack.c.h.b16 %v2205_v1  ;;  %vm2856_vm13 = vcmask 924672   ;;  %vm2853_vm14 = vcmask 7168   ;;  %s2094_s27 = sshll.u32 %s2918_s10, 3 }
   0xd   : > { %v362_v2 = vand.u32 127, %v361_v0  ;;  %399 = vst [vmem:[#allocation2 + $0xc] sm:$0x3] %v2205_v1  ;;  %2196 = vset.pattern.permute.xlu2 %v2205_v1  ;;  %s342_s21 = scalar_lea.vmem %s2843_s0, %s2093_s18  ;;  %s347_s18 = scalar_lea.vmem %s2850_s7, %s2094_s27 }
   0xe   : > { %400 = vst [vmem:[#allocation3] sm:$0xff] %v2205_v1  ;;  %v392_v10 = vld [vmem:[%s342_s21] sm:$0xf]  ;;  %s2095_s20 = sshll.u32 %s2918_s10, 4 }
   0xf   : > { %v363_v3 = vadd.s32 128, %v362_v2  ;;  %v368_v4 = vand.u32 15, %v362_v2  ;;  %401 = vst [vmem:[#allocation3 + $0x8] sm:$0xff] %v2205_v1  ;;  %s352_s24 = scalar_lea.vmem %s2851_s8, %s2095_s20 }
  0x10   : > { %402 = vst [vmem:[#allocation3 + $0x10] sm:$0xff] %v2205_v1 }
  0x11   : > { %v375_v5 = vand.u32 15, %v363_v3  ;;  %vm388_vm0 = vcmp.ne.s32.totalorder %v368_v4, 0  ;;  %403 = vst [vmem:[#allocation3 + $0x18] sm:$0xff] %v2205_v1  ;;  %vm2286_vm3 = vcmp.ne.s32.totalorder %v368_v4, 15 }
  0x12   : > { %404 = vst [vmem:[#allocation3 + $0x20] sm:$0xff] %v2205_v1 }
  0x13   : > { %vm389_vm1 = vcmp.ne.s32.totalorder %v375_v5, 0  ;;  %405 = vst [vmem:[#allocation3 + $0x28] sm:$0xff] %v2205_v1  ;;  %vm391_vm4 = vcmp.ne.s32.totalorder %v375_v5, 15 }
  0x14   : > { %vm424_vm2 = vmpackc.low %vm389_vm1, %vm388_vm0  ;;  %406 = vst [vmem:[#allocation3 + $0x30] sm:$0xff] %v2205_v1  ;;  %v625_v9 = vld [vmem:[#allocation2 + $0xc] sm:$0x3]  ;;  %vm2857_vm0 = vcmask 908288  }
  0x15   : > { %v425_v6 = vsel %vm424_vm2, 65537, %v2205_v1  ;;  %407 = vst [vmem:[#allocation3 + $0x38] sm:$0xff] %v2205_v1  ;;  %vm482_vm5 = vmpackc.low %vm391_vm4, %vm2286_vm3  ;;  %v591_v11 = vld [vmem:[#allocation2 + $0xc] sm:$0x3] }
  0x16   : > { %520 = vrot.lane.b32.xlu1 %v425_v6, %s2206_s11  ;;  %408 = vst [vmem:[#allocation3 + $0x40] sm:$0xff] %v2205_v1  ;;  %592 = vrot.lane.b32.xlu0 %v425_v6, %s2207_s12  ;;  %v483_v8 = vsel %vm482_vm5, 65537, %v2205_v1  ;;  %v2322_v12 = vld [vmem:[#allocation2 + $0xc] sm:$0x3] }
  0x17   : > { %409 = vst [vmem:[#allocation3 + $0x48] sm:$0xff] %v2205_v1  ;;  %426 = vrot.lane.b32.xlu2 %v425_v6, %s2208_s13  ;;  %v2324_v13 = vld [vmem:[#allocation2 + $0xc] sm:$0x3] }
  0x18   : > { %410 = vst [vmem:[#allocation3 + $0x50] sm:$0xff] %v2205_v1 }
  0x19   : > { %411 = vst [vmem:[#allocation3 + $0x58] sm:$0xff] %v2205_v1 }
  0x1a   : > { %412 = vst [vmem:[#allocation3 + $0x60] sm:$0xff] %v2205_v1 }
  0x1b   : > { %413 = vst [vmem:[#allocation3 + $0x68] sm:$0xff] %v2205_v1 }
  0x1c   : > { %414 = vst [vmem:[#allocation3 + $0x70] sm:$0xff] %v2205_v1 }
  0x1d   : > { %415 = vst [vmem:[#allocation3 + $0x78] sm:$0xff] %v2205_v1 }
  0x1e   : > { %416 = vst [vmem:[#allocation3 + $0x80] sm:$0xff] %v2205_v1  ;;  %484 = vrot.lane.b32.xlu1 %v483_v8, %s2209_s14  ;;  %558 = vrot.lane.b32.xlu0 %v483_v8, %s2210_s15 }
  0x1f   : > { %417 = vst [vmem:[#allocation3 + $0x88] sm:$0xff] %v2205_v1  ;;  %641 = vrot.lane.b32.xlu2 %v483_v8, %s2211_s16 }
  0x20   : > { %1200 = vst [vmem:[#allocation2 + $0x10] sm:$0xf] %v2205_v1 }
  0x21   : > { %1204 = vst [vmem:[#allocation2 + $0x1c] sm:$0xf] %v2205_v1 }
  0x22   : > { %395 = vst [vmem:[#allocation1] ss:$2 sm:$0xff] %v392_v10 }
  0x23   : > { %856 = vst [vmem:[#allocation2 + $0xc] sm:$0xf] %v2205_v1 }
  0x26   : > { %630 = vrot.lane.b32.xlu1 %v625_v9, %s2212_s17 }
  0x29   : > { %v396_v14 = vld.sshfl [vmem:[#allocation1] sm:$0xff pattern:$0x75643120] }
  0x2a   : > { %398 = vst [vmem:[#allocation2 + $0x4] sm:$0x33] %v396_v14  ;;  %v2327_v15 = vld [vmem:[#allocation2 + $0xc] sm:$0xf] }
  0x2b   : > { %v2329_v16 = vld [vmem:[#allocation2 + $0xc] sm:$0xf] }
  0x2c   : > { %v2331_v17 = vld [vmem:[#allocation2 + $0xc] sm:$0xf] }
  0x2d   : > { %v2333_v19 = vld [vmem:[#allocation2 + $0xc] sm:$0xf] }
  0x2e   : > { %1203 = vst [vmem:[#allocation2 + $0xc] sm:$0xf] %v2205_v1 }
  0x31   : > { %v624_v18 = vld [vmem:[#allocation2 + $0x4] sm:$0x33] }
  0x32   : > { %628 = vrot.lane.b32.xlu0 %v624_v18, %s2212_s17  ;;  %v2341_v25 = vld [vmem:[#allocation2] sm:$0x33]  ;;  %v477_v62 = vld [vmem:[#allocation2 + $0x8] sm:$0x3] }
  0x33   : > { %v2343_v26 = vld [vmem:[#allocation2] sm:$0x33] }
  0x34   : > { %v2354_v30 = vld [vmem:[#allocation2] sm:$0x33] }
  0x35   : > { %v2356_v31 = vld [vmem:[#allocation2] sm:$0x33] }
  0x36   : > { %854 = vst [vmem:[#allocation2] sm:$0xf] %v2205_v1  ;;  %v590_v38 = vld [vmem:[#allocation2 + $0x4] sm:$0x33] }
  0x37   : > { %v556_v2 = vld [vmem:[#allocation2 + $0x4] sm:$0x33] }
  0x71   : > { %v2337_v20 = vpop.permute.xlu2 %426 }
  0x72   : > { %v2382_v51 = vrot.slane %v2337_v20, 4 }
  0x79   : > { %v2339_v21 = vpop.permute.xlu2 %641 }
  0x7a   : > { %v2352_v29 = vrot.slane %v2339_v21, 4 }
  0x7c   : > { %v652_v39 = vunpack.c.l.b16 %v2352_v29  ;;  %v653_v40 = vunpack.c.h.b16 %v2352_v29 }
  0x7e   : > { %vm2385_vm1 = vcmp.ne.s32.totalorder %v652_v39, %v2346_v27  ;;  %vm2390_vm2 = vcmp.ne.s32.totalorder %v653_v40, %v2349_v28  ;;  %v438_v40 = vunpack.c.l.b16 %v2382_v51 }
  0x7f   : > { %vm2402_vm5 = vmpackc.low %vm2390_vm2, %vm2385_vm1 }
  0x80   : > { %v988_v14 = vsel %vm2402_vm5, %v2333_v19, 0 }
  0x88   : > { %v521_v22 = vpop.permute.xlu1 %520  ;;  %v593_v23 = vpop.permute.xlu0 %592 }
  0x89   : > { %v594_v24 = vrot.slane %v593_v23, 4  ;;  %v522_v35 = vrot.slane %v521_v22, 4 }
  0x8b   : > { %v595_v32 = vsel %vm2854_vm6, %v594_v24, %v593_v23  ;;  %v603_v36 = vunpack.c.l.b16 %v594_v24  ;;  %v604_v37 = vunpack.c.h.b16 %v594_v24  ;;  %v524_v46 = vsel %vm2855_vm7, %v522_v35, %v521_v22 }
  0x8c   : > { %v596_v33 = vunpack.c.l.b16 %v595_v32  ;;  %v597_v34 = vunpack.c.h.b16 %v595_v32  ;;  %v532_v50 = vunpack.c.l.b16 %v522_v35  ;;  %v525_v58 = vunpack.c.l.b16 %v524_v46  ;;  %v1426_v32 = vld [vmem:[#allocation2 + $0xc] sm:$0xf] }
  0x8d   : > { %vm607_vm10 = vcmp.ne.s32.totalorder %v603_v36, %v2346_v27  ;;  %vm608_vm11 = vcmp.ne.s32.totalorder %v604_v37, %v2349_v28  ;;  %v533_v59 = vunpack.c.h.b16 %v522_v35  ;;  %v526_v4 = vunpack.c.h.b16 %v524_v46 }
  0x8e   : > { %vm600_vm8 = vcmp.ne.s32.totalorder %v596_v33, %v2346_v27  ;;  %vm601_vm9 = vcmp.ne.s32.totalorder %v597_v34, %v2349_v28  ;;  %vm2370_vm15 = vmpackc.low %vm608_vm11, %vm607_vm10  ;;  %v430_v22 = vsel %vm2857_vm0, %v2382_v51, %v2337_v20  ;;  %v519_v33 = vld [vmem:[#allocation2 + $0x8] sm:$0x3]  ;;  %vm2858_vm0 = vcmask 138240  }
  0x8f   : > { %vm2366_vm12 = vmpackc.low %vm601_vm9, %vm600_vm8  ;;  %v611_v49 = vsel %vm2370_vm15, %v591_v11, 0  ;;  %v431_v23 = vunpack.c.l.b16 %v430_v22  ;;  %v432_v24 = vunpack.c.h.b16 %v430_v22  ;;  %v644_v37 = vsel %vm2858_vm0, %v2352_v29, %v2339_v21  ;;  %v639_v21 = vld [vmem:[#allocation2 + $0x4] sm:$0x33] }
  0x90   : > { %v485_v42 = vpop.permute.xlu1 %484  ;;  %v559_v43 = vpop.permute.xlu0 %558  ;;  %v610_v45 = vsel %vm2366_vm12, %v590_v38, 0  ;;  %616 = vrot.lane.b32.xlu0 %v611_v49, %s2209_s14  ;;  %v645_v39 = vunpack.c.l.b16 %v644_v37  ;;  %v1481_v38 = vld [vmem:[%s2849_s6 + $0x10] sm:$0xff] }
  0x91   : > { %v486_v47 = vrot.slane %v485_v42, 4  ;;  %v560_v48 = vrot.slane %v559_v43, 4  ;;  %614 = vrot.lane.b32.xlu2 %v610_v45, %s2209_s14 }
  0x93   : > { %v488_v54 = vsel %vm2856_vm13, %v486_v47, %v485_v42  ;;  %v496_v55 = vunpack.c.l.b16 %v486_v47  ;;  %v497_v56 = vunpack.c.h.b16 %v486_v47  ;;  %v561_v57 = vsel %vm2853_vm14, %v560_v48, %v559_v43  ;;  %v462_v43 = vld [vmem:[#allocation2 + $0x8] sm:$0x3] }
  0x94   : > { %v562_v60 = vunpack.c.l.b16 %v561_v57  ;;  %v563_v61 = vunpack.c.h.b16 %v561_v57  ;;  %v569_v63 = vunpack.c.l.b16 %v560_v48  ;;  %v570_v0 = vunpack.c.h.b16 %v560_v48 }
  0x95   : > { %vm500_vm3 = vcmp.ne.s32.totalorder %v496_v55, %v2346_v27  ;;  %vm501_vm4 = vcmp.ne.s32.totalorder %v497_v56, %v2349_v28  ;;  %v489_v5 = vunpack.c.l.b16 %v488_v54  ;;  %v490_v7 = vunpack.c.h.b16 %v488_v54  ;;  %v2112_v54 = vld [vmem:[#allocation3 + $0x74] sm:$0xf0]  ;;  %v1903_v56 = vld [vmem:[#allocation3 + $0x78] sm:$0xf0] }
  0x96   : > { %vm566_vm8 = vcmp.ne.s32.totalorder %v562_v60, %v2346_v27  ;;  %vm567_vm9 = vcmp.ne.s32.totalorder %v563_v61, %v2349_v28  ;;  %vm2408_vm10 = vmpackc.low %vm501_vm4, %vm500_vm3  ;;  %vm573_vm11 = vcmp.ne.s32.totalorder %v569_v63, %v2346_v27  ;;  %vm574_vm1 = vcmp.ne.s32.totalorder %v570_v0, %v2349_v28  ;;  %872 = vst [vmem:[#allocation3 + $0x78] sm:$0xff] %v2205_v1  ;;  %v2524_v61 = vld [vmem:[#allocation3 + $0x24] sm:$0xf0]  ;;  %v2108_v63 = vld [vmem:[#allocation3 + $0x54] sm:$0xf0] }
  0x97   : > { %v504_v8 = vsel %vm2408_vm10, %v477_v62, 0  ;;  %vm2416_vm2 = vmpackc.low %vm567_vm9, %vm566_vm8  ;;  %vm536_vm3 = vcmp.ne.s32.totalorder %v532_v50, %v2346_v27  ;;  %vm537_vm4 = vcmp.ne.s32.totalorder %v533_v59, %v2349_v28  ;;  %vm529_vm8 = vcmp.ne.s32.totalorder %v525_v58, %v2346_v27  ;;  %v1895_v58 = vld [vmem:[#allocation3 + $0x68] sm:$0xf0]  ;;  %v554_v59 = vld [vmem:[#allocation2 + $0x4] sm:$0x33] }
  0x98   : > { %vm2420_vm14 = vmpackc.low %vm574_vm1, %vm573_vm11  ;;  %v576_v11 = vsel %vm2416_vm2, %v556_v2, 0  ;;  %vm530_vm9 = vcmp.ne.s32.totalorder %v526_v4, %v2349_v28  ;;  %509 = vrot.lane.b32.xlu0 %v504_v8, %s2207_s12  ;;  %vm493_vm11 = vcmp.ne.s32.totalorder %v489_v5, %v2346_v27  ;;  %vm494_vm1 = vcmp.ne.s32.totalorder %v490_v7, %v2349_v28  ;;  %v631_v48 = vpop.permute.xlu1 %630  ;;  %555 = vst [vmem:[#allocation3 + $0x40] sm:$0x33] %v554_v59  ;;  %v2526_v62 = vld [vmem:[#allocation3 + $0x28] sm:$0xf0] }
  0x99   : > { %v577_v18 = vsel %vm2420_vm14, %v2322_v12, 0  ;;  %580 = vrot.lane.b32.xlu1 %v576_v11, %s2206_s11  ;;  %vm2444_vm6 = vmpackc.low %vm537_vm4, %vm536_vm3  ;;  %vm435_vm3 = vcmp.ne.s32.totalorder %v431_v23, %v2346_v27  ;;  %vm436_vm4 = vcmp.ne.s32.totalorder %v432_v24, %v2349_v28  ;;  %v439_v42 = vunpack.c.h.b16 %v2382_v51  ;;  %v1887_v0 = vld [vmem:[#allocation3 + $0x58] sm:$0xf0]  ;;  %862 = vst [vmem:[#allocation3 + $0x28] sm:$0xff] %v2205_v1  ;;  %v2530_v2 = vld [vmem:[#allocation3 + $0x44] sm:$0xf0] }
  0x9a   : > { %582 = vrot.lane.b32.xlu2 %v577_v18, %s2206_s11  ;;  %vm2448_vm7 = vmpackc.low %vm530_vm9, %vm529_vm8  ;;  %v540_v20 = vsel %vm2444_vm6, %v519_v33, 0  ;;  %vm649_vm9 = vcmp.ne.s32.totalorder %v645_v39, %v2346_v27  ;;  %v942_v47 = vsel %vm2420_vm14, %v2329_v16, 0  ;;  %v633_v49 = vrot.slane %v631_v48, 4  ;;  %v2110_v16 = vld [vmem:[#allocation3 + $0x64] sm:$0xf0]  ;;  %868 = vst [vmem:[#allocation3 + $0x58] sm:$0xff] %v2205_v1 }
  0x9b   : > { %vm2452_vm13 = vmpackc.low %vm494_vm1, %vm493_vm11  ;;  %v539_v35 = vsel %vm2448_vm7, %v2341_v25, 0  ;;  %v646_v25 = vunpack.c.h.b16 %v644_v37  ;;  %vm442_vm1 = vcmp.ne.s32.totalorder %v438_v40, %v2346_v27  ;;  %870 = vst [vmem:[#allocation3 + $0x68] sm:$0xff] %v2205_v1  ;;  %v2532_v4 = vld [vmem:[#allocation3 + $0x48] sm:$0xf0]  ;;  %v2535_v7 = vld [vmem:[#allocation3 + $0x34] sm:$0xf0] }
  0x9c   : > { %v503_v36 = vsel %vm2452_vm13, %v2343_v26, 0  ;;  %vm2472_vm8 = vmpackc.low %vm436_vm4, %vm435_vm3  ;;  %vm443_vm3 = vcmp.ne.s32.totalorder %v439_v42, %v2349_v28  ;;  %866 = vst [vmem:[#allocation3 + $0x48] sm:$0xff] %v2205_v1  ;;  %v2537_v8 = vld [vmem:[#allocation3 + $0x38] sm:$0xf0]  ;;  %v2542_v33 = vld [vmem:[#allocation3 + $0x14] sm:$0xf0] }
  0x9d   : > { %v445_v26 = vsel %vm2472_vm8, %v2354_v30, 0  ;;  %vm650_vm11 = vcmp.ne.s32.totalorder %v646_v25, %v2349_v28  ;;  %v419_v30 = vld [vmem:[#allocation2 + $0x8] sm:$0x3]  ;;  %vm2493_vm0 = vmpackc.low %vm443_vm3, %vm442_vm1  ;;  %v692_v28 = vld [vmem:[%s2845_s2] sm:$0xff]  ;;  %864 = vst [vmem:[#allocation3 + $0x38] sm:$0xff] %v2205_v1  ;;  %vm2890_vm1 = vcmask 924672  }
  0x9e   : > { %vm2489_vm4 = vmpackc.low %vm650_vm11, %vm649_vm9  ;;  %v446_v27 = vsel %vm2493_vm0, %v419_v30, 0  ;;  %vm455_vm9 = vcmask 1043456   ;;  %vm2859_vm11 = vcmask 916480   ;;  %vm2891_vm3 = vcmask 1039360   ;;  %v2556_v48 = vld [vmem:[#allocation3 + $0x4] sm:$0xf0] }
  0x9f   : > { %v659_v46 = vsel %vm2489_vm4, %v639_v21, 0 }
  0xa0   : > { %543 = vrot.lane.b32.xlu0 %v539_v35, %s2210_s15 }
  0xa1   : > { %545 = vrot.lane.b32.xlu1 %v540_v20, %s2210_s15  ;;  %v2544_v20 = vld [vmem:[#allocation3 + $0x18] sm:$0xf0] }
  0xa2   : > { %507 = vrot.lane.b32.xlu2 %v503_v36, %s2207_s12  ;;  %860 = vst [vmem:[#allocation3 + $0x18] sm:$0xff] %v2205_v1 }
  0xa4   : > { %v629_v50 = vpop.permute.xlu0 %628 }
  0xa5   : > { %v632_v51 = vrot.slane %v629_v50, 4 }
  0xa8   : > { %449 = vrot.lane.b32.xlu0 %v445_v26, %s2211_s16 }
  0xa9   : > { %465 = vrot.lane.b32.xlu1 %v2356_v31, %s2213_s22  ;;  %v660_v31 = vsel %vm2402_vm5, %v2324_v13, 0  ;;  %v958_v13 = vsel %vm2370_vm15, %v2327_v15, 0  ;;  %v634_v15 = vsel %vm455_vm9, %v632_v51, %v633_v49  ;;  %v2558_v49 = vld [vmem:[#allocation3 + $0x8] sm:$0xf0] }
  0xaa   : > { %467 = vrot.lane.b32.xlu2 %v462_v43, %s2213_s22  ;;  %v636_v52 = vsel %vm2859_vm11, %v629_v50, %v634_v15  ;;  %858 = vst [vmem:[#allocation3 + $0x8] sm:$0xff] %v2205_v1  ;;  %vm2895_vm11 = vcmask 908288  }
  0xab   : > { %638 = vst [vmem:[#allocation3 + $0x70] sm:$0x33] %v636_v52 }
  0xb0   : > { %665 = vrot.lane.b32.xlu0 %v660_v31, %s2208_s13 }
  0xb1   : > { %451 = vrot.lane.b32.xlu1 %v446_v27, %s2211_s16 }
  0xb2   : > { %663 = vrot.lane.b32.xlu2 %v659_v46, %s2208_s13  ;;  %v1901_v53 = vld [vmem:[#allocation3 + $0x70] sm:$0xf] }
  0xb3   : > { %v1902_v55 = vor.u32 %v2112_v54, %v1901_v53  ;;  %v1877_v53 = vld [vmem:[#allocation3 + $0x40] sm:$0xf] }
  0xb5   : > { %798 = vmatpush.bf16.msra.mxu0 %v1902_v55 }
  0xb8   : > { %977 = vrot.lane.b32.xlu0 %v2331_v17, %s2212_s17  ;;  %v2111_v17 = vld [vmem:[#allocation3 + $0x74] sm:$0xf] }
  0xb9   : > { %695 = vperm.xlu1 %2174, %v692_v28   ;;  %v1906_v57 = vor.u32 %v2111_v17, %v1903_v56  ;;  %v2105_v56 = vld [vmem:[#allocation3 + $0x44] sm:$0xf] }
  0xba   : > { %963 = vrot.lane.b32.xlu2 %v958_v13, %s2209_s14  ;;  %v2551_v13 = vld [vmem:[#allocation3 + $0x84] sm:$0xf0] }
  0xbb   : > { %824 = vmatpush.bf16.msra.mxu2 %v1906_v57 }
  0xc1   : > { %947 = vrot.lane.b32.xlu1 %v942_v47, %s2206_s11  ;;  %v2553_v47 = vld [vmem:[#allocation3 + $0x88] sm:$0xf0] }
  0xc2   : > { %874 = vst [vmem:[#allocation3 + $0x88] sm:$0xff] %v2205_v1 }
  0xeb   : > { %v615_v60 = vpop.permute.xlu2 %614 }
  0xec   : > { %v618_v18 = vrot.slane %v615_v60, 4 }
  0xf4   : > { %v583_v5 = vpop.permute.xlu2 %582 }
  0xf5   : > { %v585_v37 = vrot.slane %v583_v5, 4  ;;  %v1878_v5 = vor.u32 %v2530_v2, %v1877_v53 }
  0xfc   : > { %v508_v35 = vpop.permute.xlu2 %507 }
  0xfd   : > { %v511_v40 = vrot.slane %v508_v35, 4 }
 0x102   : > { %v617_v11 = vpop.permute.xlu0 %616 }
 0x103   : > { %v619_v22 = vrot.slane %v617_v11, 4  ;;  %v1882_v11 = vor.u32 %v2105_v56, %v2532_v4 }
 0x104   : > { %v468_v57 = vpop.permute.xlu2 %467 }
 0x105   : > { %v620_v23 = vsel %vm455_vm9, %v618_v18, %v619_v22 }
 0x106   : > { %v621_v24 = vsel %vm2890_vm1, %v615_v60, %v620_v23  ;;  %vm2892_vm1 = vcmask 121856   ;;  %v470_v60 = vrot.slane %v468_v57, 4 }
 0x107   : > { %623 = vst [vmem:[#allocation3 + $0x60] sm:$0x33] %v621_v24 }
 0x10a   : > { %v510_v39 = vpop.permute.xlu0 %509 }
 0x10b   : > { %v581_v36 = vpop.permute.xlu1 %580  ;;  %v512_v42 = vrot.slane %v510_v39, 4 }
 0x10c   : > { %v584_v25 = vrot.slane %v581_v36, 4  ;;  %v664_v2 = vpop.permute.xlu2 %663 }
 0x10d   : > { %v513_v43 = vsel %vm455_vm9, %v511_v40, %v512_v42 }
 0x10e   : > { %v586_v26 = vsel %vm455_vm9, %v584_v25, %v585_v37  ;;  %v515_v30 = vsel %vm2892_vm1, %v508_v35, %v513_v43  ;;  %v1893_v31 = vld [vmem:[#allocation3 + $0x60] sm:$0xf]  ;;  %v2109_v46 = vld [vmem:[#allocation3 + $0x64] sm:$0xf]  ;;  %vm472_vm1 = vcmask 130048   ;;  %v667_v43 = vrot.slane %v664_v2, 4 }
 0x10f   : > { %v587_v21 = vsel %vm2891_vm3, %v581_v36, %v586_v26  ;;  %517 = vst [vmem:[#allocation3 + $0x20] sm:$0x33] %v515_v30  ;;  %v1894_v27 = vor.u32 %v2110_v16, %v1893_v31  ;;  %v1898_v28 = vor.u32 %v2109_v46, %v1895_v58  ;;  %vm2893_vm3 = vcmask 7168  }
 0x110   : > { %589 = vst [vmem:[#allocation3 + $0x50] sm:$0x33] %v587_v21 }
 0x111   : > { %799 = vmatpush.bf16.msra.mxu0 %v1894_v27  ;;  %825 = vmatpush.bf16.msra.mxu2 %v1898_v28 }
 0x112   : > { %v544_v51 = vpop.permute.xlu0 %543 }
 0x113   : > { %v546_v50 = vpop.permute.xlu1 %545  ;;  %v547_v52 = vrot.slane %v544_v51, 4 }
 0x114   : > { %v548_v15 = vrot.slane %v546_v50, 4 }
 0x116   : > { %v549_v54 = vsel %vm455_vm9, %v547_v52, %v548_v15  ;;  %v1861_v39 = vld [vmem:[#allocation3 + $0x20] sm:$0xf]  ;;  %v2101_v4 = vld [vmem:[#allocation3 + $0x24] sm:$0xf] }
 0x117   : > { %v1885_v17 = vld [vmem:[#allocation3 + $0x50] sm:$0xf]  ;;  %v2107_v55 = vld [vmem:[#allocation3 + $0x54] sm:$0xf]  ;;  %v551_v16 = vsel %vm2893_vm3, %v544_v51, %v549_v54  ;;  %v1862_v30 = vor.u32 %v2524_v61, %v1861_v39  ;;  %v1866_v31 = vor.u32 %v2101_v4, %v2526_v62  ;;  %vm2894_vm3 = vcmask 138240   ;;  %v673_v61 = vld [vmem:[%s2844_s1] sm:$0xff] }
 0x118   : > { %v1886_v58 = vor.u32 %v2108_v63, %v1885_v17  ;;  %v1890_v59 = vor.u32 %v2107_v55, %v1887_v0  ;;  %553 = vst [vmem:[#allocation3 + $0x30] sm:$0x33] %v551_v16  ;;  %v699_v62 = vunpack.c.l.b16 %v673_v61  ;;  %v700_v52 = vunpack.c.h.b16 %v673_v61  ;;  %v1334_v61 = vld [vmem:[#allocation2 + $0xc] sm:$0xf] }
 0x11a   : > { %800 = vmatpush.bf16.msra.mxu0 %v1886_v58  ;;  %826 = vmatpush.bf16.msra.mxu2 %v1890_v59  ;;  %v450_v22 = vpop.permute.xlu0 %449  ;;  %v701_v16 = vpack.c.b16 %v699_v62, %v699_v62  ;;  %v702_v58 = vpack.c.b16 %v700_v52, %v700_v52  ;;  %v1336_v62 = vld [vmem:[#allocation2 + $0x1c] sm:$0xf]  ;;  %v1338_v52 = vsel %vm2420_vm14, %v1334_v61, 0 }
 0x11b   : > { %v466_v18 = vpop.permute.xlu1 %465  ;;  %v453_v40 = vrot.slane %v450_v22, 4 }
 0x11c   : > { %v469_v23 = vrot.slane %v466_v18, 4 }
 0x11e   : > { %v471_v24 = vsel %vm455_vm9, %v469_v23, %v470_v60  ;;  %801 = vmatpush.bf16.msra.mxu0 %v1878_v5  ;;  %827 = vmatpush.bf16.msra.mxu2 %v1882_v11 }
 0x11f   : > { %v473_v35 = vsel %vm472_vm1, %v466_v18, %v471_v24  ;;  %v1869_v63 = vld [vmem:[#allocation3 + $0x30] sm:$0xf]  ;;  %v2103_v0 = vld [vmem:[#allocation3 + $0x34] sm:$0xf] }
 0x120   : > { %475 = vst [vmem:[#allocation3 + $0x10] sm:$0x33] %v473_v35  ;;  %v1870_v36 = vor.u32 %v2535_v7, %v1869_v63  ;;  %v1874_v37 = vor.u32 %v2103_v0, %v2537_v8 }
 0x122   : > { %802 = vmatpush.bf16.msra.mxu0 %v1870_v36  ;;  %828 = vmatpush.bf16.msra.mxu2 %v1874_v37  ;;  %v666_v42 = vpop.permute.xlu0 %665 }
 0x123   : > { %v452_v25 = vpop.permute.xlu1 %451  ;;  %v668_v21 = vrot.slane %v666_v42, 4 }
 0x124   : > { %v454_v26 = vrot.slane %v452_v25, 4 }
 0x125   : > { %v669_v7 = vsel %vm455_vm9, %v667_v43, %v668_v21 }
 0x126   : > { %v456_v46 = vsel %vm455_vm9, %v453_v40, %v454_v26  ;;  %803 = vmatpush.bf16.msra.mxu0 %v1862_v30  ;;  %829 = vmatpush.bf16.msra.mxu2 %v1866_v31  ;;  %v670_v50 = vsel %vm2895_vm11, %v664_v2, %v669_v7  ;;  %v1022_v30 = vld [vmem:[%s2847_s4 + $0x8] sm:$0xff]  ;;  %v1400_v7 = vld [vmem:[#allocation2 + $0x1c] sm:$0xf]  ;;  %vm2898_vm11 = vcmask 1039360  }
 0x127   : > { %v458_v8 = vsel %vm2894_vm3, %v450_v22, %v456_v46  ;;  %v1853_v27 = vld [vmem:[#allocation3 + $0x10] sm:$0xf]  ;;  %v2099_v28 = vld [vmem:[#allocation3 + $0x14] sm:$0xf]  ;;  %672 = vst [vmem:[#allocation3 + $0x80] sm:$0x33] %v670_v50 }
 0x128   : > { %460 = vst [vmem:[#allocation3] sm:$0x33] %v458_v8  ;;  %v1854_v51 = vor.u32 %v2542_v33, %v1853_v27  ;;  %v1858_v15 = vor.u32 %v2099_v28, %v2544_v20  ;;  %v1398_v46 = vld [vmem:[#allocation2 + $0xc] sm:$0xf]  ;;  %v1368_v28 = vld [vmem:[#allocation2 + $0x1c] sm:$0xf] }
 0x129   : > { %v2176_v8 = vpack.i.bf16 %v1400_v7, %v1398_v46  ;;  %v1366_v27 = vld [vmem:[#allocation2 + $0xc] sm:$0xf]  ;;  %vm2899_vm3 = vcmask 7168  }
 0x12a   : > { %804 = vmatpush.bf16.msra.mxu0 %v1854_v51  ;;  %830 = vmatpush.bf16.msra.mxu2 %v1858_v15  ;;  %v1370_v50 = vsel %vm2370_vm15, %v1366_v27, 0  ;;  %v1372_v51 = vsel %vm2370_vm15, %v1368_v28, 0  ;;  %vm2896_vm15 = vcmask 916480  }
 0x12b   : > { %v2181_v15 = vpack.i.bf16 %v1372_v51, %v1370_v50 }
 0x12e   : > { %v1909_v17 = vld [vmem:[#allocation3 + $0x80] sm:$0xf]  ;;  %v2113_v55 = vld [vmem:[#allocation3 + $0x84] sm:$0xf] }
 0x12f   : > { %v1845_v53 = vld [vmem:[#allocation3] sm:$0xf]  ;;  %v2097_v54 = vld [vmem:[#allocation3 + $0x4] sm:$0xf]  ;;  %v1910_v33 = vor.u32 %v2551_v13, %v1909_v17  ;;  %v1914_v20 = vor.u32 %v2113_v55, %v2553_v47  ;;  %v964_v17 = vpop.permute.xlu2 %963  ;;  %v978_v55 = vpop.permute.xlu0 %977 }
 0x130   : > { %v1846_v56 = vor.u32 %v2556_v48, %v1845_v53  ;;  %v1850_v57 = vor.u32 %v2097_v54, %v2558_v49  ;;  %v696_v48 = vpop.permute.xlu1 %695  ;;  %v1340_v53 = vsel %vm2420_vm14, %v1336_v62, 0  ;;  %vm2897_vm14 = vcmask 924672  }
 0x131   : > { %818 = vmatpush.bf16.msra.mxu1 %v1910_v33  ;;  %844 = vmatpush.bf16.msra.mxu3 %v1914_v20  ;;  %v2186_v54 = vpack.i.bf16 %v1340_v53, %v1338_v52  ;;  %v2124_v52 = vld [vmem:[#allocation3 + $0x34] sm:$0xf0] }
 0x132   : > { %805 = vmatpush.bf16.msra.mxu0 %v1846_v56  ;;  %831 = vmatpush.bf16.msra.mxu2 %v1850_v57  ;;  %v980_v56 = vrot.slane %v978_v55, 4 }
 0x134   : > { %1916 = vmatmul.msk.bf16.vlgmr.msra.gmra.mxu3 %vm472_vm1, %v702_v58  ;;  %1915 = vmatmul.msk.bf16.vlgmr.msra.gmra.mxu1 %vm472_vm1, %v702_v58 }
 0x135   : > { %806 = vmatmul.bf16.vlgmr.msra.gmra.mxu0 %v701_v16  ;;  %832 = vmatmul.bf16.vlgmr.msra.gmra.mxu2 %v701_v16  ;;  %v2132_v16 = vld [vmem:[#allocation3 + $0x74] sm:$0xf0] }
 0x1b1   : > { %v820_v60 = vpop.f32.mrf.mxu1 }
 0x1b2   : > { %v807_v59 = vpop.f32.mrf.mxu0 }
 0x1b3   : > { %v808_v49 = vadd.f32 %v807_v59, %v696_v48  ;;  %v948_v59 = vpop.permute.xlu1 %947 }
 0x1b5   : > { %v821_v13 = vadd.f32 %v820_v60, %v808_v49  ;;  %v966_v60 = vrot.slane %v964_v17, 4 }
 0x1b7   : > { %v846_v47 = vpop.f32.mrf.mxu3  ;;  %v850_v22 = vmax.f32 %v821_v13, 0.0 }
 0x1b8   : > { %v833_v5 = vpop.f32.mrf.mxu2 }
 0x1b9   : > { %v834_v11 = vadd.f32 %v833_v5, %v696_v48  ;;  %v822_v24 = vpop.f32.mrf.mxu1 }
 0x1ba   : > { %v809_v18 = vpop.f32.mrf.mxu0 }
 0x1bb   : > { %v847_v23 = vadd.f32 %v846_v47, %v834_v11  ;;  %v950_v47 = vrot.slane %v948_v59, 4 }
 0x1bd   : > { %v851_v35 = vmax.f32 %v847_v23, 0.0 }
 0x1bf   : > { %v852_v63 = vpack.c.bf16 %v851_v35, %v850_v22  ;;  %v848_v36 = vpop.f32.mrf.mxu3 }
 0x1c0   : > { %v835_v0 = vpop.f32.mrf.mxu2 }
 0x1c1   : > { %853 = vst [vmem:[%s347_s18] sm:$0xff] %v852_v63  ;;  %975 = vrot.lane.b32.xlu2 %v852_v63, %s2212_s17  ;;  %v957_v37 = vsel %vm2366_vm12, %v852_v63, 0  ;;  %v941_v2 = vsel %vm2416_vm2, %v852_v63, 0  ;;  %v987_v26 = vsel %vm2489_vm4, %v852_v63, 0 }
 0x1c2   : > { %855 = vst [vmem:[#allocation2 + $0x4] sm:$0xff] %v852_v63  ;;  %961 = vrot.lane.b32.xlu1 %v957_v37, %s2209_s14  ;;  %945 = vrot.lane.b32.xlu0 %v941_v2, %s2206_s11  ;;  %v2130_v2 = vld [vmem:[#allocation3 + $0x64] sm:$0xf0] }
 0x1c3   : > { %938 = vst [vmem:[#allocation3 + $0x40] sm:$0xff] %v852_v63 }
 0x1c9   : > { %v891_v39 = vld [vmem:[#allocation2] sm:$0xff]  ;;  %v922_v4 = vld [vmem:[#allocation2 + $0x8] sm:$0xf] }
 0x1ca   : > { %895 = vrot.lane.b32.xlu2 %v891_v39, %s2213_s22  ;;  %993 = vrot.lane.b32.xlu1 %v988_v14, %s2208_s13  ;;  %v924_v25 = vsel %vm2444_vm6, %v922_v4, 0  ;;  %1199 = vst [vmem:[#allocation2] sm:$0xf] %v2205_v1  ;;  %v923_v40 = vsel %vm2448_vm7, %v891_v39, 0  ;;  %v907_v42 = vsel %vm2452_vm13, %v891_v39, 0  ;;  %v877_v1 = vsel %vm2472_vm8, %v891_v39, 0 }
 0x1cb   : > { %929 = vrot.lane.b32.xlu0 %v924_v25, %s2210_s15  ;;  %v906_v19 = vld [vmem:[#allocation2 + $0x8] sm:$0xf]  ;;  %v1959_v7 = vld [vmem:[#allocation3 + $0x40] sm:$0xf] }
 0x1cc   : > { %v908_v14 = vsel %vm2408_vm10, %v906_v19, 0  ;;  %v892_v43 = vld [vmem:[#allocation2 + $0x8] sm:$0xf]  ;;  %v2128_v19 = vld [vmem:[#allocation3 + $0x54] sm:$0xf0] }
 0x1cd   : > { %v876_v21 = vld [vmem:[#allocation2 + $0x8] sm:$0xf] }
 0x1ce   : > { %v878_v31 = vsel %vm2493_vm0, %v876_v21, 0 }
 0x1d2   : > { %927 = vrot.lane.b32.xlu2 %v923_v40, %s2210_s15  ;;  %911 = vrot.lane.b32.xlu1 %v907_v42, %s2207_s12 }
 0x1d3   : > { %991 = vrot.lane.b32.xlu0 %v987_v26, %s2208_s13 }
 0x1da   : > { %913 = vrot.lane.b32.xlu2 %v908_v14, %s2207_s12  ;;  %881 = vrot.lane.b32.xlu1 %v877_v1, %s2211_s16 }
 0x1db   : > { %897 = vrot.lane.b32.xlu0 %v892_v43, %s2213_s22 }
 0x1e2   : > { %883 = vrot.lane.b32.xlu2 %v878_v31, %s2211_s16  ;;  %1030 = vperm.xlu1 %2174, %v1022_v30  }
 0x1ea   : > { %2177 = vrot.lane.b32.xlu1 %v2176_v8, %s2212_s17  ;;  %v2126_v8 = vld [vmem:[#allocation3 + $0x44] sm:$0xf0] }
 0x1f2   : > { %2182 = vrot.lane.b32.xlu1 %v2181_v15, %s2209_s14  ;;  %v1960_v15 = vor.u32 %v2126_v8, %v1959_v7 }
 0x1fa   : > { %2187 = vrot.lane.b32.xlu1 %v2186_v54, %s2206_s11 }
 0x21b   : > { %v976_v57 = vpop.permute.xlu2 %975 }
 0x21c   : > { %v979_v44 = vrot.slane %v976_v57, 4 }
 0x21e   : > { %v981_v33 = vsel %vm455_vm9, %v979_v44, %v980_v56 }
 0x21f   : > { %v982_v20 = vsel %vm2896_vm15, %v976_v57, %v981_v33  ;;  %vm2900_vm15 = vcmask 121856   ;;  %v2122_v33 = vld [vmem:[#allocation3 + $0x24] sm:$0xf0] }
 0x220   : > { %984 = vst [vmem:[#allocation3 + $0x70] sm:$0xff] %v982_v20 }
 0x224   : > { %v2642_v10 = vpop.permute.xlu2 %895 }
 0x225   : > { %v899_v57 = vrot.slane %v2642_v10, 4 }
 0x227   : > { %v1983_v58 = vld [vmem:[#allocation3 + $0x70] sm:$0xf] }
 0x228   : > { %v1984_v48 = vor.u32 %v2132_v16, %v1983_v58  ;;  %v2134_v16 = vld [vmem:[#allocation3 + $0x84] sm:$0xf0]  ;;  %v2131_v58 = vld [vmem:[#allocation3 + $0x74] sm:$0xf] }
 0x22a   : > { %1135 = vmatpush.bf16.msrb.mxu1 %v1984_v48  ;;  %v1985_v48 = vld [vmem:[#allocation3 + $0x78] sm:$0xf0] }
 0x22c   : > { %v928_v11 = vpop.permute.xlu2 %927 }
 0x22d   : > { %v931_v36 = vrot.slane %v928_v11, 4 }
 0x234   : > { %v962_v49 = vpop.permute.xlu1 %961  ;;  %v946_v5 = vpop.permute.xlu0 %945 }
 0x235   : > { %v965_v13 = vrot.slane %v962_v49, 4  ;;  %v949_v18 = vrot.slane %v946_v5, 4  ;;  %v914_v39 = vpop.permute.xlu2 %913 }
 0x236   : > { %v916_v1 = vrot.slane %v914_v39, 4 }
 0x237   : > { %v967_v22 = vsel %vm455_vm9, %v965_v13, %v966_v60  ;;  %v951_v24 = vsel %vm455_vm9, %v949_v18, %v950_v47  ;;  %v2115_v13 = vld [vmem:[%s2846_s3 + $0x4] sm:$0xf] }
 0x238   : > { %v968_v23 = vsel %vm2897_vm14, %v962_v49, %v967_v22  ;;  %v952_v35 = vsel %vm2898_vm11, %v946_v5, %v951_v24  ;;  %vm2901_vm14 = vcmask 908288   ;;  %vm2902_vm11 = vcmask 138240   ;;  %v1921_v5 = vld [vmem:[%s2846_s3 + $0x8] sm:$0xf0]  ;;  %v1021_v22 = vld [vmem:[%s2847_s4] sm:$0xff] }
 0x239   : > { %970 = vst [vmem:[#allocation3 + $0x60] sm:$0xff] %v968_v23  ;;  %1025 = vperm.xlu0 %2175, %v1021_v22   ;;  %v1988_v24 = vor.u32 %v2131_v58, %v1985_v48 }
 0x23a   : > { %954 = vst [vmem:[#allocation3 + $0x50] sm:$0xff] %v952_v35  ;;  %v1924_v35 = vor.u32 %v2115_v13, %v1921_v5 }
 0x23c   : > { %v994_v63 = vpop.permute.xlu1 %993 }
 0x23d   : > { %v930_v0 = vpop.permute.xlu0 %929  ;;  %v996_v31 = vrot.slane %v994_v63, 4  ;;  %v884_v61 = vpop.permute.xlu2 %883 }
 0x23e   : > { %v932_v37 = vrot.slane %v930_v0, 4  ;;  %v886_v54 = vrot.slane %v884_v61, 4  ;;  %v1977_v0 = vld [vmem:[#allocation3 + $0x68] sm:$0xf0] }
 0x240   : > { %v933_v4 = vsel %vm455_vm9, %v931_v36, %v932_v37  ;;  %v1975_v25 = vld [vmem:[#allocation3 + $0x60] sm:$0xf]  ;;  %v2129_v63 = vld [vmem:[#allocation3 + $0x64] sm:$0xf]  ;;  %v2120_v37 = vld [vmem:[#allocation3 + $0x14] sm:$0xf0] }
 0x241   : > { %v934_v40 = vsel %vm2899_vm3, %v928_v11, %v933_v4  ;;  %v1976_v42 = vor.u32 %v2130_v2, %v1975_v25  ;;  %v1967_v26 = vld [vmem:[#allocation3 + $0x50] sm:$0xf]  ;;  %v1980_v36 = vor.u32 %v2129_v63, %v1977_v0  ;;  %v1969_v2 = vld [vmem:[#allocation3 + $0x58] sm:$0xf0]  ;;  %v2125_v25 = vld [vmem:[#allocation3 + $0x44] sm:$0xf] }
 0x242   : > { %936 = vst [vmem:[#allocation3 + $0x30] sm:$0xff] %v934_v40  ;;  %v1968_v30 = vor.u32 %v2128_v19, %v1967_v26  ;;  %v1961_v40 = vld [vmem:[#allocation3 + $0x48] sm:$0xf0]  ;;  %v2118_v19 = vld [vmem:[#allocation3 + $0x4] sm:$0xf0] }
 0x243   : > { %1136 = vmatpush.bf16.msrb.mxu1 %v1976_v42 }
 0x244   : > { %v912_v14 = vpop.permute.xlu1 %911 }
 0x245   : > { %v915_v43 = vrot.slane %v912_v14, 4  ;;  %v992_v21 = vpop.permute.xlu0 %991 }
 0x246   : > { %v995_v46 = vrot.slane %v992_v21, 4 }
 0x247   : > { %v917_v27 = vsel %vm455_vm9, %v915_v43, %v916_v1  ;;  %1137 = vmatpush.bf16.msrb.mxu1 %v1968_v30  ;;  %v1919_v43 = vld [vmem:[%s2846_s3] sm:$0xf] }
 0x248   : > { %v918_v28 = vsel %vm2900_vm15, %v912_v14, %v917_v27  ;;  %v997_v50 = vsel %vm455_vm9, %v995_v46, %v996_v31  ;;  %v1993_v14 = vld [vmem:[#allocation3 + $0x88] sm:$0xf0]  ;;  %v1964_v31 = vor.u32 %v2125_v25, %v1961_v40  ;;  %v1953_v27 = vld [vmem:[#allocation3 + $0x38] sm:$0xf0] }
 0x249   : > { %920 = vst [vmem:[#allocation3 + $0x20] sm:$0xff] %v918_v28  ;;  %v998_v51 = vsel %vm2901_vm14, %v992_v21, %v997_v50  ;;  %v1951_v62 = vld [vmem:[#allocation3 + $0x30] sm:$0xf]  ;;  %v2116_v21 = vld [vmem:[%s2846_s3 + $0x4] sm:$0xf0] }
 0x24a   : > { %1000 = vst [vmem:[#allocation3 + $0x80] sm:$0xff] %v998_v51  ;;  %v1952_v56 = vor.u32 %v2124_v52, %v1951_v62  ;;  %v1920_v7 = vor.u32 %v2116_v21, %v1919_v43  ;;  %v2123_v8 = vld [vmem:[#allocation3 + $0x34] sm:$0xf]  ;;  %v1945_v51 = vld [vmem:[#allocation3 + $0x28] sm:$0xf0] }
 0x24b   : > { %1138 = vmatpush.bf16.msrb.mxu1 %v1960_v15  ;;  %v1956_v28 = vor.u32 %v2123_v8, %v1953_v27  ;;  %v1937_v62 = vld [vmem:[#allocation3 + $0x18] sm:$0xf0] }
 0x24c   : > { %v882_v53 = vpop.permute.xlu1 %881 }
 0x24d   : > { %v885_v17 = vrot.slane %v882_v53, 4  ;;  %v898_v55 = vpop.permute.xlu0 %897 }
 0x24e   : > { %v900_v44 = vrot.slane %v898_v55, 4 }
 0x24f   : > { %v887_v20 = vsel %vm455_vm9, %v885_v17, %v886_v54  ;;  %1139 = vmatpush.bf16.msrb.mxu1 %v1952_v56  ;;  %v1929_v54 = vld [vmem:[#allocation3 + $0x8] sm:$0xf0] }
 0x250   : > { %v888_v59 = vsel %vm2902_vm11, %v882_v53, %v887_v20  ;;  %v901_v49 = vsel %vm455_vm9, %v899_v57, %v900_v44  ;;  %v1943_v60 = vld [vmem:[#allocation3 + $0x20] sm:$0xf]  ;;  %v2121_v50 = vld [vmem:[#allocation3 + $0x24] sm:$0xf] }
 0x251   : > { %890 = vst [vmem:[#allocation3] sm:$0xff] %v888_v59  ;;  %v902_v47 = vsel %vm472_vm1, %v2642_v10, %v901_v49  ;;  %v1944_v11 = vor.u32 %v2122_v33, %v1943_v60  ;;  %v1991_v18 = vld [vmem:[#allocation3 + $0x80] sm:$0xf]  ;;  %v2127_v10 = vld [vmem:[#allocation3 + $0x54] sm:$0xf]  ;;  %v1948_v15 = vor.u32 %v2121_v50, %v1945_v51 }
 0x252   : > { %904 = vst [vmem:[#allocation3 + $0x10] sm:$0xff] %v902_v47  ;;  %v1992_v23 = vor.u32 %v2134_v16, %v1991_v18  ;;  %v1972_v42 = vor.u32 %v2127_v10, %v1969_v2  ;;  %v2133_v1 = vld [vmem:[#allocation3 + $0x84] sm:$0xf]  ;;  %v1482_v51 = vld [vmem:[%s2849_s6 + $0x18] sm:$0xff] }
 0x253   : > { %1140 = vmatpush.bf16.msrb.mxu1 %v1944_v11  ;;  %v1996_v46 = vor.u32 %v2133_v1, %v1993_v14 }
 0x254   : > { %1156 = vmatpush.bf16.msrb.mxu3 %v1992_v23  ;;  %v1031_v60 = vpop.permute.xlu1 %1030 }
 0x257   : > { %1997 = vmatmul.msk.bf16.vlgmr.msrb.gmra.mxu3 %vm472_vm1, %v1924_v35 }
 0x258   : > { %1163 = vmatpush.bf16.msra.mxu3 %v1988_v24  ;;  %v1927_v26 = vld [vmem:[#allocation3] sm:$0xf]  ;;  %v2117_v53 = vld [vmem:[#allocation3 + $0x4] sm:$0xf] }
 0x259   : > { %v1935_v39 = vld [vmem:[#allocation3 + $0x10] sm:$0xf]  ;;  %v1928_v30 = vor.u32 %v2118_v19, %v1927_v26  ;;  %v2119_v61 = vld [vmem:[#allocation3 + $0x14] sm:$0xf]  ;;  %v1932_v17 = vor.u32 %v2117_v53, %v1929_v54 }
 0x25a   : > { %v1936_v4 = vor.u32 %v2120_v37, %v1935_v39  ;;  %v1940_v52 = vor.u32 %v2119_v61, %v1937_v62  ;;  %v1428_v61 = vld [vmem:[#allocation2 + $0x1c] sm:$0xf]  ;;  %v1430_v62 = vsel %vm2402_vm5, %v1426_v32, 0 }
 0x25c   : > { %1164 = vmatpush.bf16.msra.mxu3 %v1980_v36  ;;  %1141 = vmatpush.bf16.msrb.mxu1 %v1936_v4  ;;  %v2178_v54 = vpop.permute.xlu1 %2177 }
 0x260   : > { %1165 = vmatpush.bf16.msra.mxu3 %v1972_v42  ;;  %1142 = vmatpush.bf16.msrb.mxu1 %v1928_v30 }
 0x263   : > { %1143 = vmatmul.bf16.vlgmr.msrb.gmra.mxu1 %v1920_v7 }
 0x264   : > { %1166 = vmatpush.bf16.msra.mxu3 %v1964_v31  ;;  %1184 = vmatpush.bf16.msra.mxu1 %v1996_v46 }
 0x268   : > { %1167 = vmatpush.bf16.msra.mxu3 %v1956_v28  ;;  %v1479_v28 = vld [vmem:[%s2849_s6] sm:$0xff] }
 0x26c   : > { %1168 = vmatpush.bf16.msra.mxu3 %v1948_v15 }
 0x270   : > { %1169 = vmatpush.bf16.msra.mxu3 %v1940_v52  ;;  %v1432_v52 = vsel %vm2402_vm5, %v1428_v61, 0  ;;  %vm2908_vm5 = vcmask 1039360  }
 0x271   : > { %v2191_v53 = vpack.i.bf16 %v1432_v52, %v1430_v62 }
 0x273   : > { %1998 = vmatmul.msk.bf16.vlgmr.msra.gmra.mxu1 %vm472_vm1, %v1924_v35 }
 0x274   : > { %1170 = vmatpush.bf16.msra.mxu3 %v1932_v17  ;;  %v2179_v17 = vunpack.i.l.bf16 %v2178_v54 }
 0x277   : > { %1171 = vmatmul.bf16.vlgmr.msra.gmra.mxu3 %v1920_v7 }
 0x2ab   : > { %v1026_v33 = vpop.permute.xlu0 %1025 }
 0x2da   : > { %v1158_v56 = vpop.f32.mrf.mxu3 }
 0x2e0   : > { %v1144_v55 = vpop.f32.mrf.mxu1 }
 0x2e1   : > { %v1145_v20 = vadd.f32 %v1144_v55, %v1026_v33  ;;  %v1414_v55 = vrot.slane %v2179_v17, 4 }
 0x2e2   : > { %v1160_v44 = vpop.f32.mrf.mxu3 }
 0x2e3   : > { %v1159_v48 = vadd.f32 %v1158_v56, %v1145_v20 }
 0x2e5   : > { %v1191_v13 = vmax.f32 %v1159_v48, 0.0 }
 0x2e8   : > { %v1146_v57 = vpop.f32.mrf.mxu1 }
 0x2e9   : > { %v1147_v5 = vadd.f32 %v1146_v57, %v1031_v60 }
 0x2eb   : > { %v1161_v22 = vadd.f32 %v1160_v44, %v1147_v5 }
 0x2ed   : > { %v1193_v63 = vmax.f32 %v1161_v22, 0.0 }
 0x2f0   : > { %v1186_v16 = vpop.f32.mrf.mxu1 }
 0x2f8   : > { %v1188_v24 = vpop.f32.mrf.mxu1 }
 0x2fa   : > { %v1172_v58 = vpop.f32.mrf.mxu3 }
 0x2fb   : > { %v1173_v59 = vadd.f32 %v1172_v58, %v1026_v33  ;;  %v2183_v33 = vpop.permute.xlu1 %2182 }
 0x2fd   : > { %v1187_v49 = vadd.f32 %v1186_v16, %v1173_v59  ;;  %v2180_v16 = vunpack.i.h.bf16 %v2178_v54 }
 0x2ff   : > { %v1192_v47 = vmax.f32 %v1187_v49, 0.0  ;;  %v1416_v58 = vrot.slane %v2180_v16, 4 }
 0x301   : > { %v1195_v11 = vpack.c.bf16 %v1192_v47, %v1191_v13 }
 0x302   : > { %v1174_v18 = vpop.f32.mrf.mxu3 }
 0x303   : > { %1197 = vst [vmem:[%s352_s24] sm:$0xff] %v1195_v11  ;;  %v1175_v23 = vadd.f32 %v1174_v18, %v1031_v60  ;;  %1405 = vrot.lane.b32.xlu2 %v1195_v11, %s2212_s17  ;;  %v1369_v25 = vsel %vm2366_vm12, %v1195_v11, 0  ;;  %v1337_v26 = vsel %vm2416_vm2, %v1195_v11, 0  ;;  %v1429_v41 = vsel %vm2489_vm4, %v1195_v11, 0  ;;  %v2188_v59 = vpop.permute.xlu1 %2187 }
 0x304   : > { %1201 = vst [vmem:[#allocation2 + $0x4] sm:$0xff] %v1195_v11 }
 0x305   : > { %v1189_v35 = vadd.f32 %v1188_v24, %v1175_v23  ;;  %1331 = vst [vmem:[#allocation3 + $0x40] sm:$0xff] %v1195_v11 }
 0x307   : > { %v1194_v0 = vmax.f32 %v1189_v35, 0.0 }
 0x309   : > { %v2682_v36 = vpack.c.bf16 %v1194_v0, %v1193_v63 }
 0x30b   : > { %1198 = vst [vmem:[%s352_s24 + $0x8] sm:$0xff] %v2682_v36  ;;  %v1238_v37 = vld [vmem:[#allocation2 + $0x8] sm:$0xf]  ;;  %v1237_v2 = vld [vmem:[#allocation2] sm:$0xff]  ;;  %v1371_v46 = vsel %vm2366_vm12, %v2682_v36, 0  ;;  %v1339_v27 = vsel %vm2416_vm2, %v2682_v36, 0  ;;  %vm2910_vm2 = vmmov %vm2899_vm3 }
 0x30c   : > { %v1298_v10 = vld [vmem:[#allocation2 + $0x8] sm:$0xf]  ;;  %1202 = vst [vmem:[#allocation2 + $0x14] sm:$0xff] %v2682_v36  ;;  %1247 = vrot.lane.b32.xlu0 %v1238_v37, %s2213_s22  ;;  %1245 = vrot.lane.b32.xlu2 %v1237_v2, %s2213_s22  ;;  %v1269_v42 = vsel %vm2452_vm13, %v1237_v2, 0  ;;  %v1301_v1 = vsel %vm2448_vm7, %v1237_v2, 0  ;;  %v1209_v31 = vsel %vm2472_vm8, %v1237_v2, 0  ;;  %v2185_v37 = vunpack.i.h.bf16 %v2183_v33  ;;  %vm2913_vm3 = vmmov %vm2901_vm14 }
 0x30d   : > { %v1302_v39 = vsel %vm2444_vm6, %v1298_v10, 0  ;;  %1332 = vst [vmem:[#allocation3 + $0x48] sm:$0xff] %v2682_v36  ;;  %v1266_v4 = vld [vmem:[#allocation2 + $0x8] sm:$0xf]  ;;  %v1431_v45 = vsel %vm2489_vm4, %v2682_v36, 0  ;;  %v2184_v10 = vunpack.i.l.bf16 %v2183_v33  ;;  %vm2905_vm12 = vcmask 924672   ;;  %vm2912_vm4 = vmmov %vm2910_vm2 }
 0x30e   : > { %1311 = vrot.lane.b32.xlu1 %v1302_v39, %s2210_s15  ;;  %v1270_v40 = vsel %vm2408_vm10, %v1266_v4, 0  ;;  %v1206_v30 = vld [vmem:[#allocation2 + $0x8] sm:$0xf] }
 0x30f   : > { %v1210_v7 = vsel %vm2493_vm0, %v1206_v30, 0 }
 0x313   : > { %v1239_v19 = vld [vmem:[#allocation2 + $0x10] sm:$0xff]  ;;  %v1268_v14 = vld [vmem:[#allocation2 + $0x18] sm:$0xf] }
 0x314   : > { %1377 = vrot.lane.b32.xlu0 %v1369_v25, %s2209_s14  ;;  %1279 = vrot.lane.b32.xlu2 %v1270_v40, %s2207_s12  ;;  %v1240_v43 = vld [vmem:[#allocation2 + $0x18] sm:$0xf]  ;;  %v1272_v21 = vsel %vm2408_vm10, %v1268_v14, 0  ;;  %v1271_v12 = vsel %vm2452_vm13, %v1239_v19, 0  ;;  %v1303_v9 = vsel %vm2448_vm7, %v1239_v19, 0  ;;  %v1211_v34 = vsel %vm2472_vm8, %v1239_v19, 0  ;;  %vm2906_vm13 = vmmov %vm2905_vm12 }
 0x315   : > { %v1300_v6 = vld [vmem:[#allocation2 + $0x18] sm:$0xf]  ;;  %v1388_v40 = vrot.slane %v2185_v37, 4  ;;  %vm2909_vm10 = vmmov %vm2908_vm5 }
 0x316   : > { %1277 = vrot.lane.b32.xlu1 %v1269_v42, %s2207_s12  ;;  %v1304_v8 = vsel %vm2444_vm6, %v1300_v6, 0  ;;  %v1208_v50 = vld [vmem:[#allocation2 + $0x18] sm:$0xf]  ;;  %vm2903_vm6 = vcmask 916480   ;;  %v1386_v42 = vrot.slane %v2184_v10, 4  ;;  %v2190_v6 = vunpack.i.h.bf16 %v2188_v59  ;;  %vm2911_vm8 = vmmov %vm2902_vm11 }
 0x317   : > { %v1212_v15 = vsel %vm2493_vm0, %v1208_v50, 0  ;;  %vm2904_vm7 = vmmov %vm2903_vm6 }
 0x318   : > { %vm2907_vm0 = vmmov %vm2900_vm15 }
 0x319   : > { %vm2914_vm15 = vmmov %vm2907_vm0 }
 0x31a   : > { %vm2915_vm14 = vmmov %vm2911_vm8 }
 0x31b   : > { %vm2916_vm11 = vmmov %vm2913_vm3 }
 0x31c   : > { %1345 = vrot.lane.b32.xlu0 %v1337_v26, %s2206_s11  ;;  %1409 = vrot.lane.b32.xlu2 %v2682_v36, %s2212_s17 }
 0x31e   : > { %1249 = vrot.lane.b32.xlu1 %v1239_v19, %s2213_s22 }
 0x324   : > { %1309 = vrot.lane.b32.xlu0 %v1301_v1, %s2210_s15  ;;  %1251 = vrot.lane.b32.xlu2 %v1240_v43, %s2213_s22 }
 0x326   : > { %1283 = vrot.lane.b32.xlu1 %v1272_v21, %s2207_s12 }
 0x32c   : > { %1217 = vrot.lane.b32.xlu0 %v1209_v31, %s2211_s16  ;;  %1381 = vrot.lane.b32.xlu2 %v1371_v46, %s2209_s14 }
 0x32e   : > { %1219 = vrot.lane.b32.xlu1 %v1210_v7, %s2211_s16 }
 0x334   : > { %1315 = vrot.lane.b32.xlu0 %v1304_v8, %s2210_s15  ;;  %1349 = vrot.lane.b32.xlu2 %v1339_v27, %s2206_s11  ;;  %v2189_v8 = vunpack.i.l.bf16 %v2188_v59 }
 0x336   : > { %1437 = vrot.lane.b32.xlu1 %v1429_v41, %s2208_s13 }
 0x33c   : > { %1281 = vrot.lane.b32.xlu0 %v1271_v12, %s2207_s12  ;;  %1313 = vrot.lane.b32.xlu2 %v1303_v9, %s2210_s15  ;;  %v1356_v12 = vrot.slane %v2190_v6, 4  ;;  %v1354_v9 = vrot.slane %v2189_v8, 4  ;;  %s2096_s15 = sshll.u32 %s2918_s10, 5 }
 0x33d   : > { %s2834_s25 = scalar_lea.vmem %s2852_s9, %s2096_s15 }
 0x33e   : > { %1485 = vperm.xlu1 %2174, %v1479_v28  }
 0x344   : > { %1223 = vrot.lane.b32.xlu0 %v1212_v15, %s2211_s16  ;;  %1221 = vrot.lane.b32.xlu2 %v1211_v34, %s2211_s16 }
 0x346   : > { %1500 = vperm.xlu1 %2174, %v1482_v51  }
 0x34c   : > { %1441 = vrot.lane.b32.xlu0 %v1431_v45, %s2208_s13  ;;  %2192 = vrot.lane.b32.xlu2 %v2191_v53, %s2208_s13 }
 0x354   : > { %1495 = vperm.xlu0 %2175, %v1481_v38  }
 0x35d   : > { %v1406_v56 = vpop.permute.xlu2 %1405 }
 0x35e   : > { %v1413_v3 = vrot.slane %v1406_v56, 4 }
 0x360   : > { %v1417_v57 = vsel %vm455_vm9, %v1413_v3, %v1414_v55 }
 0x361   : > { %v1418_v44 = vsel %vm2903_vm6, %v1406_v56, %v1417_v57 }
 0x362   : > { %1423 = vst [vmem:[#allocation3 + $0x70] sm:$0xff] %v1418_v44 }
 0x366   : > { %v1246_v29 = vpop.permute.xlu2 %1245 }
 0x367   : > { %v1253_v11 = vrot.slane %v1246_v29, 4 }
 0x369   : > { %v2073_v24 = vld [vmem:[#allocation3 + $0x70] sm:$0xf]  ;;  %v2153_v0 = vld [vmem:[#allocation3 + $0x74] sm:$0xf] }
 0x36e   : > { %v1280_v20 = vpop.permute.xlu2 %1279 }
 0x36f   : > { %v1286_v1 = vrot.slane %v1280_v20, 4 }
 0x376   : > { %v1410_v48 = vpop.permute.xlu2 %1409 }
 0x377   : > { %v1415_v49 = vrot.slane %v1410_v48, 4 }
 0x379   : > { %v1419_v60 = vsel %vm455_vm9, %v1415_v49, %v1416_v58 }
 0x37a   : > { %v1420_v13 = vsel %vm2904_vm7, %v1410_v48, %v1419_v60 }
 0x37b   : > { %1424 = vst [vmem:[#allocation3 + $0x78] sm:$0xff] %v1420_v13 }
 0x37e   : > { %v1248_v5 = vpop.permute.xlu0 %1247  ;;  %v1252_v47 = vpop.permute.xlu2 %1251 }
 0x37f   : > { %v1254_v18 = vrot.slane %v1248_v5, 4  ;;  %v1256_v34 = vrot.slane %v1252_v47, 4 }
 0x380   : > { %v2768_v22 = vpop.permute.xlu1 %1311 }
 0x381   : > { %v1257_v23 = vsel %vm455_vm9, %v1253_v11, %v1254_v18  ;;  %v1318_v33 = vrot.slane %v2768_v22, 4 }
 0x382   : > { %v1258_v35 = vsel %vm472_vm1, %v1246_v29, %v1257_v23  ;;  %v2154_v63 = vld [vmem:[#allocation3 + $0x74] sm:$0xf0]  ;;  %v2075_v36 = vld [vmem:[#allocation3 + $0x78] sm:$0xf0]  ;;  %v2148_v23 = vld [vmem:[#allocation3 + $0x44] sm:$0xf0] }
 0x383   : > { %1263 = vst [vmem:[#allocation3 + $0x10] sm:$0xff] %v1258_v35  ;;  %v2074_v2 = vor.u32 %v2154_v63, %v2073_v24  ;;  %v2078_v39 = vor.u32 %v2153_v0, %v2075_v36  ;;  %v2051_v24 = vld [vmem:[#allocation3 + $0x48] sm:$0xf0]  ;;  %v2049_v0 = vld [vmem:[#allocation3 + $0x40] sm:$0xf] }
 0x384   : > { %v2147_v36 = vld [vmem:[#allocation3 + $0x44] sm:$0xf]  ;;  %v2050_v37 = vor.u32 %v2148_v23, %v2049_v0 }
 0x385   : > { %1617 = vmatpush.bf16.msrb.mxu2 %v2074_v2  ;;  %1655 = vmatpush.bf16.msrb.mxu0 %v2078_v39  ;;  %v2054_v10 = vor.u32 %v2147_v36, %v2051_v24  ;;  %v2003_v0 = vld [vmem:[%s2848_s5 + $0x8] sm:$0xf0] }
 0x386   : > { %v1378_v4 = vpop.permute.xlu0 %1377  ;;  %v1382_v25 = vpop.permute.xlu2 %1381 }
 0x387   : > { %v1385_v26 = vrot.slane %v1378_v4, 4  ;;  %v1387_v14 = vrot.slane %v1382_v25, 4 }
 0x388   : > { %v1278_v19 = vpop.permute.xlu1 %1277 }
 0x389   : > { %v1285_v43 = vrot.slane %v1278_v19, 4  ;;  %v1389_v21 = vsel %vm455_vm9, %v1385_v26, %v1386_v42  ;;  %v1391_v30 = vsel %vm455_vm9, %v1387_v14, %v1388_v40 }
 0x38a   : > { %v1390_v31 = vsel %vm2905_vm12, %v1378_v4, %v1389_v21  ;;  %v1392_v7 = vsel %vm2906_vm13, %v1382_v25, %v1391_v30 }
 0x38b   : > { %v1289_v46 = vsel %vm455_vm9, %v1285_v43, %v1286_v1  ;;  %1395 = vst [vmem:[#allocation3 + $0x60] sm:$0xff] %v1390_v31 }
 0x38c   : > { %v1290_v27 = vsel %vm2907_vm0, %v1278_v19, %v1289_v46  ;;  %1396 = vst [vmem:[#allocation3 + $0x68] sm:$0xff] %v1392_v7 }
 0x38d   : > { %1295 = vst [vmem:[#allocation3 + $0x20] sm:$0xff] %v1290_v27 }
 0x38e   : > { %v1346_v41 = vpop.permute.xlu0 %1345  ;;  %v1350_v28 = vpop.permute.xlu2 %1349 }
 0x38f   : > { %v1353_v50 = vrot.slane %v1346_v41, 4  ;;  %v1355_v15 = vrot.slane %v1350_v28, 4 }
 0x390   : > { %v1250_v51 = vpop.permute.xlu1 %1249 }
 0x391   : > { %v1255_v32 = vrot.slane %v1250_v51, 4  ;;  %v1357_v61 = vsel %vm455_vm9, %v1353_v50, %v1354_v9  ;;  %v1359_v62 = vsel %vm455_vm9, %v1355_v15, %v1356_v12 }
 0x392   : > { %v1358_v52 = vsel %vm2908_vm5, %v1346_v41, %v1357_v61  ;;  %v1360_v45 = vsel %vm2909_vm10, %v1350_v28, %v1359_v62  ;;  %v2065_v38 = vld [vmem:[#allocation3 + $0x60] sm:$0xf]  ;;  %v2151_v54 = vld [vmem:[#allocation3 + $0x64] sm:$0xf] }
 0x393   : > { %v1259_v53 = vsel %vm455_vm9, %v1255_v32, %v1256_v34  ;;  %1363 = vst [vmem:[#allocation3 + $0x50] sm:$0xff] %v1358_v52  ;;  %v2152_v55 = vld [vmem:[#allocation3 + $0x64] sm:$0xf0]  ;;  %v2067_v56 = vld [vmem:[#allocation3 + $0x68] sm:$0xf0] }
 0x394   : > { %v1260_v17 = vsel %vm472_vm1, %v1250_v51, %v1259_v53  ;;  %1364 = vst [vmem:[#allocation3 + $0x58] sm:$0xff] %v1360_v45  ;;  %v2066_v3 = vor.u32 %v2152_v55, %v2065_v38  ;;  %v2070_v57 = vor.u32 %v2151_v54, %v2067_v56  ;;  %v2033_v62 = vld [vmem:[#allocation3 + $0x20] sm:$0xf]  ;;  %v2143_v45 = vld [vmem:[#allocation3 + $0x24] sm:$0xf] }
 0x395   : > { %1264 = vst [vmem:[#allocation3 + $0x18] sm:$0xff] %v1260_v17 }
 0x396   : > { %v1310_v44 = vpop.permute.xlu0 %1309  ;;  %v1314_v29 = vpop.permute.xlu2 %1313  ;;  %1618 = vmatpush.bf16.msrb.mxu2 %v2066_v3  ;;  %1656 = vmatpush.bf16.msrb.mxu0 %v2070_v57 }
 0x397   : > { %v1317_v20 = vrot.slane %v1310_v44, 4  ;;  %v1319_v40 = vrot.slane %v1314_v29, 4 }
 0x398   : > { %v1284_v16 = vpop.permute.xlu1 %1283 }
 0x399   : > { %v1321_v58 = vsel %vm455_vm9, %v1317_v20, %v1318_v33  ;;  %v1288_v7 = vrot.slane %v1284_v16, 4 }
 0x39a   : > { %v1322_v48 = vsel %vm2910_vm2, %v1310_v44, %v1321_v58  ;;  %v2057_v59 = vld [vmem:[#allocation3 + $0x50] sm:$0xf]  ;;  %v2149_v49 = vld [vmem:[#allocation3 + $0x54] sm:$0xf] }
 0x39b   : > { %1327 = vst [vmem:[#allocation3 + $0x30] sm:$0xff] %v1322_v48  ;;  %v2150_v60 = vld [vmem:[#allocation3 + $0x54] sm:$0xf0]  ;;  %v2059_v13 = vld [vmem:[#allocation3 + $0x58] sm:$0xf0]  ;;  %v1480_v48 = vld [vmem:[%s2849_s6 + $0x8] sm:$0xff] }
 0x39c   : > { %v2058_v5 = vor.u32 %v2150_v60, %v2057_v59  ;;  %v2062_v47 = vor.u32 %v2149_v49, %v2059_v13  ;;  %v2142_v56 = vld [vmem:[#allocation3 + $0x14] sm:$0xf0]  ;;  %v2027_v3 = vld [vmem:[#allocation3 + $0x18] sm:$0xf0]  ;;  %v2025_v44 = vld [vmem:[#allocation3 + $0x10] sm:$0xf]  ;;  %1490 = vperm.xlu2 %2196, %v1480_v48  }
 0x39d   : > { %v2026_v16 = vor.u32 %v2142_v56, %v2025_v44  ;;  %v2001_v60 = vld [vmem:[%s2848_s5] sm:$0xf]  ;;  %v2136_v13 = vld [vmem:[%s2848_s5 + $0x4] sm:$0xf0] }
 0x39e   : > { %v1218_v11 = vpop.permute.xlu0 %1217  ;;  %v1222_v18 = vpop.permute.xlu2 %1221  ;;  %1619 = vmatpush.bf16.msrb.mxu2 %v2058_v5  ;;  %1657 = vmatpush.bf16.msrb.mxu0 %v2062_v47 }
 0x39f   : > { %v1225_v22 = vrot.slane %v1218_v11, 4  ;;  %v1227_v34 = vrot.slane %v1222_v18, 4 }
 0x3a0   : > { %v1220_v35 = vpop.permute.xlu1 %1219 }
 0x3a1   : > { %v1226_v63 = vrot.slane %v1220_v35, 4 }
 0x3a2   : > { %1620 = vmatpush.bf16.msrb.mxu2 %v2050_v37  ;;  %1658 = vmatpush.bf16.msrb.mxu0 %v2054_v10  ;;  %v2041_v27 = vld [vmem:[#allocation3 + $0x30] sm:$0xf]  ;;  %v2145_v12 = vld [vmem:[#allocation3 + $0x34] sm:$0xf] }
 0x3a3   : > { %v1229_v2 = vsel %vm455_vm9, %v1225_v22, %v1226_v63  ;;  %v2002_v22 = vor.u32 %v2136_v13, %v2001_v60  ;;  %v2135_v63 = vld [vmem:[%s2848_s5 + $0x4] sm:$0xf] }
 0x3a4   : > { %v1230_v39 = vsel %vm2911_vm8, %v1218_v11, %v1229_v2 }
 0x3a5   : > { %1235 = vst [vmem:[#allocation3] sm:$0xff] %v1230_v39 }
 0x3a6   : > { %v1316_v4 = vpop.permute.xlu0 %1315  ;;  %v2193_v25 = vpop.permute.xlu2 %2192 }
 0x3a7   : > { %v1320_v42 = vrot.slane %v1316_v4, 4  ;;  %v2194_v19 = vunpack.i.l.bf16 %v2193_v25  ;;  %v2195_v54 = vunpack.i.h.bf16 %v2193_v25  ;;  %v2006_v4 = vor.u32 %v2135_v63, %v2003_v0  ;;  %v2009_v25 = vld [vmem:[%s2848_s5 + $0x10] sm:$0xf] }
 0x3a8   : > { %v1438_v26 = vpop.permute.xlu1 %1437 }
 0x3a9   : > { %v1445_v14 = vrot.slane %v1438_v26, 4  ;;  %v1323_v1 = vsel %vm455_vm9, %v1319_v40, %v1320_v42  ;;  %v1446_v43 = vrot.slane %v2194_v19, 4  ;;  %v1448_v33 = vrot.slane %v2195_v54, 4  ;;  %v2138_v40 = vld [vmem:[%s2848_s5 + $0x14] sm:$0xf0] }
 0x3aa   : > { %v1324_v21 = vsel %vm2912_vm4, %v1314_v29, %v1323_v1  ;;  %v2141_v29 = vld [vmem:[#allocation3 + $0x14] sm:$0xf]  ;;  %v2010_v42 = vor.u32 %v2138_v40, %v2009_v25 }
 0x3ab   : > { %1328 = vst [vmem:[#allocation3 + $0x38] sm:$0xff] %v1324_v21  ;;  %v1449_v30 = vsel %vm455_vm9, %v1445_v14, %v1446_v43  ;;  %v2030_v58 = vor.u32 %v2141_v29, %v2027_v3  ;;  %v2011_v19 = vld [vmem:[%s2848_s5 + $0x18] sm:$0xf0] }
 0x3ac   : > { %v1450_v31 = vsel %vm2913_vm3, %v1438_v26, %v1449_v30  ;;  %v2017_v49 = vld [vmem:[#allocation3] sm:$0xf]  ;;  %v2139_v11 = vld [vmem:[#allocation3 + $0x4] sm:$0xf]  ;;  %v2137_v26 = vld [vmem:[%s2848_s5 + $0x14] sm:$0xf] }
 0x3ad   : > { %1455 = vst [vmem:[#allocation3 + $0x80] sm:$0xff] %v1450_v31  ;;  %v2014_v14 = vor.u32 %v2137_v26, %v2011_v19 }
 0x3ae   : > { %v1282_v46 = vpop.permute.xlu0 %1281 }
 0x3af   : > { %v1287_v6 = vrot.slane %v1282_v46, 4 }
 0x3b0   : > { %v1486_v21 = vpop.permute.xlu1 %1485 }
 0x3b1   : > { %v1291_v8 = vsel %vm455_vm9, %v1287_v6, %v1288_v7 }
 0x3b2   : > { %v1292_v41 = vsel %vm2914_vm15, %v1282_v46, %v1291_v8  ;;  %v2146_v28 = vld [vmem:[#allocation3 + $0x34] sm:$0xf0]  ;;  %v2043_v9 = vld [vmem:[#allocation3 + $0x38] sm:$0xf0] }
 0x3b3   : > { %1296 = vst [vmem:[#allocation3 + $0x28] sm:$0xff] %v1292_v41  ;;  %v2042_v50 = vor.u32 %v2146_v28, %v2041_v27  ;;  %v2046_v51 = vor.u32 %v2145_v12, %v2043_v9 }
 0x3b4   : > { %v2081_v35 = vld [vmem:[#allocation3 + $0x80] sm:$0xf]  ;;  %v2155_v37 = vld [vmem:[#allocation3 + $0x84] sm:$0xf] }
 0x3b5   : > { %1621 = vmatpush.bf16.msrb.mxu2 %v2042_v50  ;;  %1659 = vmatpush.bf16.msrb.mxu0 %v2046_v51 }
 0x3b6   : > { %v1224_v15 = vpop.permute.xlu0 %1223 }
 0x3b7   : > { %v1228_v32 = vrot.slane %v1224_v15, 4 }
 0x3b9   : > { %v1231_v61 = vsel %vm455_vm9, %v1227_v34, %v1228_v32 }
 0x3ba   : > { %v1232_v52 = vsel %vm2915_vm14, %v1222_v18, %v1231_v61  ;;  %v2144_v53 = vld [vmem:[#allocation3 + $0x24] sm:$0xf0]  ;;  %v2035_v38 = vld [vmem:[#allocation3 + $0x28] sm:$0xf0] }
 0x3bb   : > { %1236 = vst [vmem:[#allocation3 + $0x8] sm:$0xff] %v1232_v52  ;;  %v2034_v17 = vor.u32 %v2144_v53, %v2033_v62  ;;  %v2038_v55 = vor.u32 %v2143_v45, %v2035_v38 }
 0x3bd   : > { %1622 = vmatpush.bf16.msrb.mxu2 %v2034_v17  ;;  %1660 = vmatpush.bf16.msrb.mxu0 %v2038_v55 }
 0x3be   : > { %v1442_v57 = vpop.permute.xlu0 %1441 }
 0x3bf   : > { %v1447_v20 = vrot.slane %v1442_v57, 4 }
 0x3c1   : > { %v1451_v59 = vsel %vm455_vm9, %v1447_v20, %v1448_v33  ;;  %1623 = vmatpush.bf16.msrb.mxu2 %v2026_v16  ;;  %1661 = vmatpush.bf16.msrb.mxu0 %v2030_v58  ;;  %v1501_v20 = vpop.permute.xlu1 %1500 }
 0x3c2   : > { %v1452_v5 = vsel %vm2916_vm11, %v1442_v57, %v1451_v59  ;;  %v2140_v47 = vld [vmem:[#allocation3 + $0x4] sm:$0xf0]  ;;  %v2019_v18 = vld [vmem:[#allocation3 + $0x8] sm:$0xf0] }
 0x3c3   : > { %1456 = vst [vmem:[#allocation3 + $0x88] sm:$0xff] %v1452_v5  ;;  %v2018_v23 = vor.u32 %v2140_v47, %v2017_v49  ;;  %v2022_v24 = vor.u32 %v2139_v11, %v2019_v18 }
 0x3c5   : > { %1624 = vmatpush.bf16.msrb.mxu2 %v2018_v23  ;;  %1662 = vmatpush.bf16.msrb.mxu0 %v2022_v24 }
 0x3c6   : > { %v1496_v52 = vpop.permute.xlu0 %1495 }
 0x3c8   : > { %1625 = vmatmul.bf16.vlgmr.msrb.gmra.mxu2 %v2002_v22  ;;  %1663 = vmatmul.bf16.vlgmr.msrb.gmra.mxu0 %v2002_v22 }
 0x3ca   : > { %v2156_v36 = vld [vmem:[#allocation3 + $0x84] sm:$0xf0]  ;;  %v2083_v10 = vld [vmem:[#allocation3 + $0x88] sm:$0xf0] }
 0x3cb   : > { %v2082_v2 = vor.u32 %v2156_v36, %v2081_v35  ;;  %v2086_v39 = vor.u32 %v2155_v37, %v2083_v10 }
 0x3cd   : > { %1643 = vmatpush.bf16.msrb.mxu1 %v2082_v2  ;;  %1681 = vmatpush.bf16.msrb.mxu3 %v2086_v39 }
 0x3d0   : > { %2087 = vmatmul.msk.bf16.vlgmr.msrb.gmra.mxu1 %vm472_vm1, %v2006_v4  ;;  %2089 = vmatmul.msk.bf16.vlgmr.msrb.gmra.mxu3 %vm472_vm1, %v2006_v4 }
 0x3d8   : > { %1630 = vmatmul.bf16.gmra.mxu2 %v2010_v42  ;;  %1668 = vmatmul.bf16.gmra.mxu0 %v2010_v42 }
 0x3e0   : > { %2088 = vmatmul.msk.bf16.gmra.mxu1 %vm472_vm1, %v2014_v14  ;;  %2090 = vmatmul.msk.bf16.gmra.mxu3 %vm472_vm1, %v2014_v14 }
 0x3f6   : > { %v1491_v12 = vpop.permute.xlu2 %1490 }
 0x445   : > { %v1664_v1 = vpop.f32.mrf.mxu0 }
 0x446   : > { %v1665_v46 = vadd.f32 %v1664_v1, %v1486_v21 }
 0x44b   : > { %v1626_v43 = vpop.f32.mrf.mxu2 }
 0x44c   : > { %v1627_v31 = vadd.f32 %v1626_v43, %v1486_v21 }
 0x44d   : > { %v1645_v30 = vpop.f32.mrf.mxu1  ;;  %v1666_v6 = vpop.f32.mrf.mxu0 }
 0x44e   : > { %v1646_v7 = vadd.f32 %v1645_v30, %v1627_v31  ;;  %v1667_v32 = vadd.f32 %v1666_v6, %v1491_v12 }
 0x450   : > { %v1693_v9 = vmax.f32 %v1646_v7, 0.0 }
 0x453   : > { %v1628_v8 = vpop.f32.mrf.mxu2  ;;  %v1683_v27 = vpop.f32.mrf.mxu3 }
 0x454   : > { %v1684_v41 = vadd.f32 %v1683_v27, %v1665_v46  ;;  %v1629_v51 = vadd.f32 %v1628_v8, %v1491_v12 }
 0x455   : > { %v1647_v28 = vpop.f32.mrf.mxu1  ;;  %v1669_v45 = vpop.f32.mrf.mxu0 }
 0x456   : > { %v1694_v50 = vmax.f32 %v1684_v41, 0.0  ;;  %v1648_v34 = vadd.f32 %v1647_v28, %v1629_v51  ;;  %v1670_v3 = vadd.f32 %v1669_v45, %v1496_v52 }
 0x458   : > { %v1701_v15 = vpack.c.bf16 %v1694_v50, %v1693_v9  ;;  %v1695_v17 = vmax.f32 %v1648_v34, 0.0 }
 0x45a   : > { %1705 = vst [vmem:[%s2834_s25] sm:$0xff] %v1701_v15 }
 0x45b   : > { %v1631_v61 = vpop.f32.mrf.mxu2  ;;  %v1685_v62 = vpop.f32.mrf.mxu3 }
 0x45c   : > { %v1686_v53 = vadd.f32 %v1685_v62, %v1667_v32  ;;  %v1632_v54 = vadd.f32 %v1631_v61, %v1496_v52 }
 0x45d   : > { %v1650_v38 = vpop.f32.mrf.mxu1  ;;  %v1671_v59 = vpop.f32.mrf.mxu0 }
 0x45e   : > { %v1696_v55 = vmax.f32 %v1686_v53, 0.0  ;;  %v1651_v57 = vadd.f32 %v1650_v38, %v1632_v54  ;;  %v1672_v13 = vadd.f32 %v1671_v59, %v1501_v20 }
 0x460   : > { %v1702_v56 = vpack.c.bf16 %v1696_v55, %v1695_v17  ;;  %v1697_v16 = vmax.f32 %v1651_v57, 0.0 }
 0x462   : > { %1706 = vst [vmem:[%s2834_s25 + $0x8] sm:$0xff] %v1702_v56 }
 0x463   : > { %v1633_v44 = vpop.f32.mrf.mxu2  ;;  %v1688_v29 = vpop.f32.mrf.mxu3 }
 0x464   : > { %v1689_v33 = vadd.f32 %v1688_v29, %v1670_v3  ;;  %v1634_v58 = vadd.f32 %v1633_v44, %v1501_v20 }
 0x465   : > { %v1652_v49 = vpop.f32.mrf.mxu1 }
 0x466   : > { %v1698_v48 = vmax.f32 %v1689_v33, 0.0  ;;  %v1653_v5 = vadd.f32 %v1652_v49, %v1634_v58 }
 0x468   : > { %v1703_v60 = vpack.c.bf16 %v1698_v48, %v1697_v16  ;;  %v1699_v18 = vmax.f32 %v1653_v5, 0.0 }
 0x46a   : > { %1707 = vst [vmem:[%s2834_s25 + $0x10] sm:$0xff] %v1703_v60 }
 0x46b   : > { %v1690_v47 = vpop.f32.mrf.mxu3 }
 0x46c   : > { %v1691_v11 = vadd.f32 %v1690_v47, %v1672_v13 }
 0x46e   : > { %v1700_v23 = vmax.f32 %v1691_v11, 0.0 }
 0x470   : > { %v1704_v24 = vpack.c.bf16 %v1700_v23, %v1699_v18 }
 0x472   : > { %1708 = vst [vmem:[%s2834_s25 + $0x18] sm:$0xff] %v1704_v24 }
 0x473 PF: > { %s20_s30 = sadd.s32 1, %s2203_s30  }
 0x474   : > { %p17_p4 = scmp.ge.s32.totalorder %s20_s30, 4  }
 0x476   :  { %19 = sbr.rel (!%p17_p4) target bundleno = 1 (0x1), region = 102 }

</bundles_post_ra>
